<compile_context>
chip_gen: v7x
topology: tpu7x:2x2x1
jax: 0.10.0
libtpu: 0.0.40
codegen_flags: <defaults>
</compile_context>

<pallas_src>
import math
import functools

import jax
import jax.numpy as jnp
from jax.experimental import pallas as pl
from jax.experimental.pallas import tpu as pltpu

NEG_BIG = 1.0e9

# Row indices inside the fused "small parameter" slab (one row per vector).
ROW_BQKV, ROW_BO, ROW_LN1G, ROW_LN1B, ROW_FFB1, ROW_FFB2 = 0, 1, 2, 3, 4, 5
ROW_GW1, ROW_GB1, ROW_GW2, ROW_GB2, ROW_LN2G, ROW_LN2B = 6, 7, 8, 9, 10, 11
N_SMALL_ROWS = 12


# ------------------------------ fused kernel --------------------------------

def _layernorm(z, g, b):
    """PyTorch LayerNorm (biased var, eps=1e-5), single reduction pass."""
    d = z.shape[-1]
    s1 = jnp.sum(z, axis=-1, keepdims=True)
    s2 = jnp.sum(z * z, axis=-1, keepdims=True)
    mu = s1 * (1.0 / d)
    var = s2 * (1.0 / d) - mu * mu
    inv = jax.lax.rsqrt(jnp.maximum(var, 0.0) + 1e-5)
    return (z - mu) * inv * g + b


def _bi_encoder_kernel(x_ref, bias_ref, valid_ref,
                       wqkv_ref, wo_ref, ffw1_ref, ffw2_ref, small_ref,
                       out_ref, x_sc, *, B, T, D, H, N):
    """One encoder layer per grid step; activations live in VMEM scratch."""
    Dh = D // N
    layer = pl.program_id(1)

    # (Re)load the input activation at the start of each encoder stack.
    @pl.when(layer == 0)
    def _():
        x_sc[...] = x_ref[...]

    x = x_sc[...]                                          # (B*T, D) f32

    # One fused slab of small per-layer parameters (single DMA per step).
    small = small_ref[...]                                 # (12, Wmax) f32
    bqkv = small[ROW_BQKV:ROW_BQKV + 1, :3 * D]
    bo   = small[ROW_BO:ROW_BO + 1, :D]
    ln1g = small[ROW_LN1G:ROW_LN1G + 1, :D]
    ln1b = small[ROW_LN1B:ROW_LN1B + 1, :D]
    ffb1 = small[ROW_FFB1:ROW_FFB1 + 1, :H]
    ffb2 = small[ROW_FFB2:ROW_FFB2 + 1, :D]
    gw1  = small[ROW_GW1:ROW_GW1 + 1, :D]
    gb1  = small[ROW_GB1:ROW_GB1 + 1, :1]
    gw2  = small[ROW_GW2:ROW_GW2 + 1, :D]
    gb2  = small[ROW_GB2:ROW_GB2 + 1, :D]
    ln2g = small[ROW_LN2G:ROW_LN2G + 1, :D]
    ln2b = small[ROW_LN2B:ROW_LN2B + 1, :D]

    # Fused Q/K/V projection (bf16 MXU inputs, f32 accumulation; Q pre-scaled).
    qkv = jnp.dot(x.astype(jnp.bfloat16), wqkv_ref[...],
                  preferred_element_type=jnp.float32) + bqkv   # (B*T, 3D) f32

    # Hoisted broadcasts (JAX does not CSE broadcast_in_dim inside the loop).
    bias = jnp.broadcast_to(bias_ref[...][None], (B, T, T))       # pre-scaled
    valid = jnp.broadcast_to(valid_ref[...][None], (B, T, 1))

    # Multi-head attention: per-head, batched over B; accumulate each head's
    # context straight into the output projection (no attn scratch).
    attn = jnp.zeros((B * T, D), jnp.float32)
    for n in range(N):
        c0 = n * Dh
        qh = qkv[:, c0:c0 + Dh].reshape(B, T, Dh).astype(jnp.bfloat16)
        kh = qkv[:, D + c0:D + c0 + Dh].reshape(B, T, Dh).astype(jnp.bfloat16)
        vh = qkv[:, 2 * D + c0:2 * D + c0 + Dh].reshape(B, T, Dh).astype(jnp.bfloat16)

        logits = jnp.einsum('bqd,bkd->bqk', qh, kh,
                            preferred_element_type=jnp.float32) + bias  # (B,T,T)
        m = jnp.max(logits, axis=-1, keepdims=True)
        e = jnp.exp(logits - m)
        inv_den = pl.reciprocal(jnp.sum(e, axis=-1, keepdims=True), approx=True)
        probs = (e * inv_den * valid).astype(jnp.bfloat16)

        ctx = jnp.einsum('bqk,bkd->bqd', probs, vh,
                         preferred_element_type=jnp.float32)            # (B,T,Dh)
        attn = attn + jnp.dot(ctx.reshape(B * T, Dh).astype(jnp.bfloat16),
                              wo_ref[c0:c0 + Dh, :],
                              preferred_element_type=jnp.float32)
    attn = attn + bo

    # ResidualBlock: LayerNorm(x + MHA(x))
    h = _layernorm(x + attn, ln1g, ln1b)

    # FeedForward: linear2(leaky_relu(linear1(h))), LeakyReLU slope 0.01
    t = jnp.dot(h.astype(jnp.bfloat16), ffw1_ref[...],
                preferred_element_type=jnp.float32) + ffb1
    t = jnp.where(t >= 0, t, 0.01 * t)
    ff = jnp.dot(t.astype(jnp.bfloat16), ffw2_ref[...],
                 preferred_element_type=jnp.float32) + ffb2

    # Highway gate FeedForward(d_model, 1): hidden dim 1 -> VPU reduce + bcast
    g1 = jnp.sum(h * gw1, axis=-1, keepdims=True) + gb1
    g1 = jnp.where(g1 >= 0, g1, 0.01 * g1)
    g_raw = g1 * gw2 + gb2
    gate = pl.reciprocal(1.0 + jnp.exp(-g_raw), approx=True)   # sigmoid via EUP

    # HighwayBlock: LayerNorm(h * g + FF(h) * (1 - g))
    out = _layernorm(h * gate + ff * (1.0 - gate), ln2g, ln2b)

    x_sc[...] = out            # carry to next layer
    out_ref[...] = out         # per-layer output (this side / this layer)


# --------------------------- parameter construction -------------------------

def init_linear_params(key, d_in, d_out):
    kw, kb = jax.random.split(key)
    bound = 1.0 / math.sqrt(d_in)
    return {'w': jax.random.uniform(kw, (d_out, d_in), jnp.float32, -bound, bound),
            'b': jax.random.uniform(kb, (d_out,), jnp.float32, -bound, bound)}


def init_ff_params(key, d_model, d_hidden):
    k1, k2 = jax.random.split(key)
    l1 = init_linear_params(k1, d_model, d_hidden)
    l2 = init_linear_params(k2, d_hidden, d_model)
    return {'w1': l1['w'], 'b1': l1['b'], 'w2': l2['w'], 'b2': l2['b']}


def init_layer_params(key, d_tar, d_hidden):
    ks = jax.random.split(key, 6)
    return {
        'wq': init_linear_params(ks[0], d_tar, d_tar),
        'wk': init_linear_params(ks[1], d_tar, d_tar),
        'wv': init_linear_params(ks[2], d_tar, d_tar),
        'wo': init_linear_params(ks[3], d_tar, d_tar),
        'ln1_g': jnp.ones((d_tar,), jnp.float32),
        'ln1_b': jnp.zeros((d_tar,), jnp.float32),
        'ff': init_ff_params(ks[4], d_tar, d_hidden),
        'gate': init_ff_params(ks[5], d_tar, 1),
        'ln2_g': jnp.ones((d_tar,), jnp.float32),
        'ln2_b': jnp.zeros((d_tar,), jnp.float32),
    }


def init_bi_encoder_params(key, d_tar, d_hidden, n_layers):
    kf, kb = jax.random.split(key)
    return {
        'front': [init_layer_params(k, d_tar, d_hidden)
                  for k in jax.random.split(kf, n_layers)],
        'back': [init_layer_params(k, d_tar, d_hidden)
                 for k in jax.random.split(kb, n_layers)],
    }


def pack_bi_encoder_params(params, d_tar, d_hidden):
    """Pre-transpose / concatenate / pre-scale weights ONCE.

    Big matmul weights -> bf16 (halves HBM streaming & VMEM double-buffering);
    all small per-layer vectors -> one f32 (12, Wmax) slab per (side, layer).
    """
    D, H = d_tar, d_hidden
    inv_scale = 1.0 / math.sqrt(D)   # attention scale = sqrt(d_key) = sqrt(d_tar)
    wmax = max(3 * D, H)

    def pack_layer(p):
        wqkv = jnp.concatenate([p['wq']['w'].T * inv_scale,   # fold 1/scale into Q
                                p['wk']['w'].T,
                                p['wv']['w'].T], axis=1)                   # (D, 3D)
        rows = [
            jnp.concatenate([p['wq']['b'] * inv_scale, p['wk']['b'], p['wv']['b']]),
            p['wo']['b'],
            p['ln1_g'], p['ln1_b'],
            p['ff']['b1'], p['ff']['b2'],
            p['gate']['w1'].reshape(-1), p['gate']['b1'].reshape(-1),
            p['gate']['w2'].reshape(-1), p['gate']['b2'],
            p['ln2_g'], p['ln2_b'],
        ]
        small = jnp.stack(
            [jnp.pad(r, (0, wmax - r.shape[0])) for r in rows]).astype(jnp.float32)
        return dict(
            wqkv=wqkv.astype(jnp.bfloat16),
            wo=p['wo']['w'].T.astype(jnp.bfloat16),
            ffw1=p['ff']['w1'].T.astype(jnp.bfloat16),
            ffw2=p['ff']['w2'].T.astype(jnp.bfloat16),
            small=small,
        )

    def stack_side(layers):
        packed = [pack_layer(p) for p in layers]
        return {k: jnp.stack([q[k] for q in packed], axis=0) for k in packed[0]}

    front = stack_side(params['front'])
    back = stack_side(params['back'])
    return {k: jnp.stack([front[k], back[k]], axis=0) for k in front}


# ------------------------------- model forward ------------------------------

def bi_encoder_forward(x, packed, n_heads):
    """x: (B, T, D) float32. Returns ([front per-layer], [back per-layer])."""
    B, T, D = x.shape
    L = packed['wqkv'].shape[1]
    H = packed['ffw1'].shape[-1]
    wmax = packed['small'].shape[-1]
    inv_scale = 1.0 / math.sqrt(D)

    idx = jnp.arange(T)
    # only_attend_front: mask j > i ;  only_attend_back: mask j <= i + 1 (tril(1))
    front_raw = jnp.where(idx[None, :] > idx[:, None], -NEG_BIG, 0.0)
    back_raw = jnp.where(idx[None, :] <= idx[:, None] + 1, -NEG_BIG, 0.0)
    bias_raw = jnp.stack([front_raw, back_raw]).astype(jnp.float32)      # (2, T, T)
    bias = bias_raw * inv_scale                                          # pre-scaled
    # validity of each query row (zero fully-masked rows) — static property of mask
    valid = (jnp.sum((bias_raw <= -5.0e8).astype(jnp.float32),
                     axis=-1, keepdims=True) < float(T)).astype(jnp.float32)  # (2,T,1)

    x2 = x.reshape(B * T, D)
    kern = functools.partial(_bi_encoder_kernel, B=B, T=T, D=D, H=H, N=n_heads)

    in_specs = [
        pl.BlockSpec((B * T, D), lambda s, l: (0, 0)),                   # resident
        pl.BlockSpec((None, T, T), lambda s, l: (s, 0, 0)),
        pl.BlockSpec((None, T, 1), lambda s, l: (s, 0, 0)),
        pl.BlockSpec((None, None, D, 3 * D), lambda s, l: (s, l, 0, 0)),
        pl.BlockSpec((None, None, D, D), lambda s, l: (s, l, 0, 0)),
        pl.BlockSpec((None, None, D, H), lambda s, l: (s, l, 0, 0)),
        pl.BlockSpec((None, None, H, D), lambda s, l: (s, l, 0, 0)),
        pl.BlockSpec((None, None, N_SMALL_ROWS, wmax), lambda s, l: (s, l, 0, 0)),
    ]

    out = pl.pallas_call(
        kern,
        out_shape=jax.ShapeDtypeStruct((2, L, B * T, D), jnp.float32),
        grid_spec=pltpu.PrefetchScalarGridSpec(
            num_scalar_prefetch=0,
            grid=(2, L),                    # (side, layer); layer iterates fastest
            in_specs=in_specs,
            out_specs=pl.BlockSpec((None, None, B * T, D),
                                   lambda s, l: (s, l, 0, 0)),
            scratch_shapes=[pltpu.VMEM((B * T, D), jnp.float32)],  # activation carry
        ),
        compiler_params=pltpu.CompilerParams(
            # Both axes "arbitrary": x_sc carry requires in-order traversal and
            # parallel-vs-arbitrary is perf-neutral.  TODO(synk): CORE_PARALLEL
            # on the side axis for v7x 2-TC.
            dimension_semantics=("arbitrary", "arbitrary"),
            vmem_limit_bytes=64 * 1024 * 1024),
    )(x2, bias, valid,
      packed['wqkv'], packed['wo'], packed['ffw1'], packed['ffw2'],
      packed['small'])

    front_h = [out[0, l].reshape(B, T, D) for l in range(L)]
    back_h = [out[1, l].reshape(B, T, D) for l in range(L)]
    return front_h, back_h


# ------------------------- pure-JAX reference (check) ------------------------

def _ref_layer(x, p, bias, n_heads, scale):
    hp = jax.lax.Precision.HIGHEST
    B, T, D = x.shape
    N, Dh = n_heads, D // n_heads
    x2 = x.reshape(B * T, D)

    def lin(z, q):
        return jnp.dot(z, q['w'].T, precision=hp) + q['b']

    def split(z):
        return z.reshape(B, T, N, Dh).transpose(0, 2, 1, 3).reshape(B * N, T, Dh)

    q, k, v = split(lin(x2, p['wq'])), split(lin(x2, p['wk'])), split(lin(x2, p['wv']))
    dots = jnp.einsum('btd,bsd->bts', q, k, precision=hp) + bias[None]
    probs = jax.nn.softmax(dots / scale, axis=-1)
    valid = (jnp.sum((dots <= -5.0e8).astype(jnp.float32), -1, keepdims=True)
             < dots.shape[-1]).astype(jnp.float32)
    attn = jnp.einsum('bts,bsd->btd', probs * valid, v, precision=hp)
    attn = lin(attn.reshape(B, N, T, Dh).transpose(0, 2, 1, 3).reshape(B * T, D), p['wo'])

    def ln(z, g, b):
        mu = z.mean(-1, keepdims=True)
        var = ((z - mu) ** 2).mean(-1, keepdims=True)
        return (z - mu) / jnp.sqrt(var + 1e-5) * g + b

    def lrelu(z):
        return jnp.where(z >= 0, z, 0.01 * z)

    h = ln(x2 + attn, p['ln1_g'], p['ln1_b'])
    ff = jnp.dot(lrelu(jnp.dot(h, p['ff']['w1'].T, precision=hp) + p['ff']['b1']),
                 p['ff']['w2'].T, precision=hp) + p['ff']['b2']
    gr = jnp.dot(lrelu(jnp.dot(h, p['gate']['w1'].T, precision=hp) + p['gate']['b1']),
                 p['gate']['w2'].T, precision=hp) + p['gate']['b2']
    g = jax.nn.sigmoid(gr)
    out = ln(h * g + ff * (1.0 - g), p['ln2_g'], p['ln2_b'])
    return out.reshape(B, T, D)


def _ref_bi(x, params, n_heads):
    B, T, D = x.shape
    scale = math.sqrt(D)
    idx = jnp.arange(T)
    fb = jnp.where(idx[None, :] > idx[:, None], -NEG_BIG, 0.0).astype(jnp.float32)
    bb = jnp.where(idx[None, :] <= idx[:, None] + 1, -NEG_BIG, 0.0).astype(jnp.float32)

    def enc(x, layers, bias):
        xs = []
        for p in layers:
            x = _ref_layer(x, p, bias, n_heads, scale)
            xs.append(x)
        return xs

    return enc(x, params['front'], fb), enc(x, params['back'], bb)


# ----------------------------------- main -----------------------------------

if __name__ == "__main__":
    B, T = 2, 8
    d_tar, d_hidden, n_heads, n_layers = 32, 64, 4, 2

    key = jax.random.PRNGKey(0)
    kx, kp = jax.random.split(key)
    x = jax.random.normal(kx, (B, T, d_tar), jnp.float32)
    params = init_bi_encoder_params(kp, d_tar, d_hidden, n_layers)
    packed = pack_bi_encoder_params(params, d_tar, d_hidden)   # done once

    front_h, back_h = bi_encoder_forward(x, packed, n_heads)
    jax.block_until_ready((front_h, back_h))

    # correctness check against a pure-JAX f32 reference (PyTorch semantics);
    # tolerance accounts for bf16 matmul weights + EUP approx reciprocal.
    ref_front, ref_back = _ref_bi(x, params, n_heads)
    for a, b in zip(front_h + back_h, ref_front + ref_back):
        assert a.shape == (B, T, d_tar)
        assert jnp.allclose(a, b, atol=5e-2, rtol=5e-2), "mismatch vs reference"

    print("KERNEL_OK")
</pallas_src>

<mosaic_0001>
module attributes {stable_mosaic.version = 11 : i64} {
  func.func @_bi_encoder_kernel(%arg0: i32, %arg1: i32, %arg2: memref<16x32xf32, #tpu.memory_space<vmem>>, %arg3: memref<1x8x8xf32, #tpu.memory_space<vmem>>, %arg4: memref<1x8x1xf32, #tpu.memory_space<vmem>>, %arg5: memref<1x1x32x96xbf16, #tpu.memory_space<vmem>>, %arg6: memref<1x1x32x32xbf16, #tpu.memory_space<vmem>>, %arg7: memref<1x1x32x64xbf16, #tpu.memory_space<vmem>>, %arg8: memref<1x1x64x32xbf16, #tpu.memory_space<vmem>>, %arg9: memref<1x1x12x96xf32, #tpu.memory_space<vmem>>, %arg10: memref<1x1x16x32xf32, #tpu.memory_space<vmem>>, %arg11: memref<16x32xf32, #tpu.memory_space<vmem>>) attributes {dimension_semantics = [#tpu.dimension_semantics<arbitrary>, #tpu.dimension_semantics<arbitrary>], iteration_bounds = array<i64: 2, 2>, scalar_prefetch = 0 : i64, scratch_operands = 1 : i64, tpu.core_type = #tpu.core_type<tc>, window_params = [{pipeline_mode = #tpu.pipeline_mode<synchronous>, transform_indices = @transform_0, window_bounds = array<i64: 16, 32>}, {transform_indices = @transform_1, window_bounds = array<i64: 1, 8, 8>}, {transform_indices = @transform_2, window_bounds = array<i64: 1, 8, 1>}, {transform_indices = @transform_3, window_bounds = array<i64: 1, 1, 32, 96>}, {transform_indices = @transform_4, window_bounds = array<i64: 1, 1, 32, 32>}, {transform_indices = @transform_5, window_bounds = array<i64: 1, 1, 32, 64>}, {transform_indices = @transform_6, window_bounds = array<i64: 1, 1, 64, 32>}, {transform_indices = @transform_7, window_bounds = array<i64: 1, 1, 12, 96>}, {transform_indices = @transform_8, window_bounds = array<i64: 1, 1, 16, 32>}]} {
    %c0_i32 = arith.constant 0 : i32
    %0 = arith.cmpi eq, %arg1, %c0_i32 : i32
    %1 = arith.extui %0 : i1 to i32
    %c0_i32_0 = arith.constant 0 : i32
    %2 = arith.cmpi ne, %1, %c0_i32_0 : i32
    scf.if %2 {
      %c0_86 = arith.constant 0 : index
      %c0_87 = arith.constant 0 : index
      %258 = vector.load %arg2[%c0_86, %c0_87] : memref<16x32xf32, #tpu.memory_space<vmem>>, vector<16x32xf32>
      %c0_88 = arith.constant 0 : index
      %c0_89 = arith.constant 0 : index
      %259 = vector.load %arg11[%c0_88, %c0_89] : memref<16x32xf32, #tpu.memory_space<vmem>>, vector<16x32xf32>
      tpu.vector_store %arg11[%c0_88, %c0_89], %258 {strides = array<i32>} : memref<16x32xf32, #tpu.memory_space<vmem>>, vector<16x32xf32>,
    } else {
    }
    %c0 = arith.constant 0 : index
    %c0_1 = arith.constant 0 : index
    %3 = vector.load %arg11[%c0, %c0_1] : memref<16x32xf32, #tpu.memory_space<vmem>>, vector<16x32xf32>
    %c0_2 = arith.constant 0 : index
    %c0_3 = arith.constant 0 : index
    %c0_4 = arith.constant 0 : index
    %c0_5 = arith.constant 0 : index
    %4 = vector.load %arg9[%c0_2, %c0_3, %c0_4, %c0_5] : memref<1x1x12x96xf32, #tpu.memory_space<vmem>>, vector<1x1x12x96xf32>
    %5 = vector.shape_cast %4 : vector<1x1x12x96xf32> to vector<12x96xf32>
    %6 = vector.extract_strided_slice %5 {offsets = [0, 0], sizes = [1, 96], strides = [1, 1]} : vector<12x96xf32> to vector<1x96xf32>
    %7 = vector.extract_strided_slice %5 {offsets = [1, 0], sizes = [1, 32], strides = [1, 1]} : vector<12x96xf32> to vector<1x32xf32>
    %8 = vector.extract_strided_slice %5 {offsets = [2, 0], sizes = [1, 32], strides = [1, 1]} : vector<12x96xf32> to vector<1x32xf32>
    %9 = vector.extract_strided_slice %5 {offsets = [3, 0], sizes = [1, 32], strides = [1, 1]} : vector<12x96xf32> to vector<1x32xf32>
    %10 = vector.extract_strided_slice %5 {offsets = [4, 0], sizes = [1, 64], strides = [1, 1]} : vector<12x96xf32> to vector<1x64xf32>
    %11 = vector.extract_strided_slice %5 {offsets = [5, 0], sizes = [1, 32], strides = [1, 1]} : vector<12x96xf32> to vector<1x32xf32>
    %12 = vector.extract_strided_slice %5 {offsets = [6, 0], sizes = [1, 32], strides = [1, 1]} : vector<12x96xf32> to vector<1x32xf32>
    %13 = vector.extract_strided_slice %5 {offsets = [7, 0], sizes = [1, 1], strides = [1, 1]} : vector<12x96xf32> to vector<1x1xf32>
    %14 = vector.extract_strided_slice %5 {offsets = [8, 0], sizes = [1, 32], strides = [1, 1]} : vector<12x96xf32> to vector<1x32xf32>
    %15 = vector.extract_strided_slice %5 {offsets = [9, 0], sizes = [1, 32], strides = [1, 1]} : vector<12x96xf32> to vector<1x32xf32>
    %16 = vector.extract_strided_slice %5 {offsets = [10, 0], sizes = [1, 32], strides = [1, 1]} : vector<12x96xf32> to vector<1x32xf32>
    %17 = vector.extract_strided_slice %5 {offsets = [11, 0], sizes = [1, 32], strides = [1, 1]} : vector<12x96xf32> to vector<1x32xf32>
    %18 = arith.truncf %3 : vector<16x32xf32> to vector<16x32xbf16>
    %c0_6 = arith.constant 0 : index
    %c0_7 = arith.constant 0 : index
    %c0_8 = arith.constant 0 : index
    %c0_9 = arith.constant 0 : index
    %19 = vector.load %arg5[%c0_6, %c0_7, %c0_8, %c0_9] : memref<1x1x32x96xbf16, #tpu.memory_space<vmem>>, vector<1x1x32x96xbf16>
    %20 = vector.shape_cast %19 : vector<1x1x32x96xbf16> to vector<32x96xbf16>
    %cst = arith.constant dense<0.000000e+00> : vector<16x96xf32>
    %21 = tpu.matmul %18, %20, %cst {dimension_numbers = #tpu.dot_dimension_numbers<[1], [0], [0], [1], [0, 0, 1, 1], [], []>} : vector<16x32xbf16>, vector<32x96xbf16>, vector<16x96xf32> -> vector<16x96xf32>
    %22 = vector.broadcast %6 : vector<1x96xf32> to vector<16x96xf32>
    %23 = arith.addf %21, %22 : vector<16x96xf32>
    %c0_10 = arith.constant 0 : index
    %c0_11 = arith.constant 0 : index
    %c0_12 = arith.constant 0 : index
    %24 = vector.load %arg3[%c0_10, %c0_11, %c0_12] : memref<1x8x8xf32, #tpu.memory_space<vmem>>, vector<1x8x8xf32>
    %25 = vector.shape_cast %24 : vector<1x8x8xf32> to vector<8x8xf32>
    %26 = vector.shape_cast %25 : vector<8x8xf32> to vector<1x8x8xf32>
    %27 = vector.shape_cast %26 : vector<1x8x8xf32> to vector<1x8x8xf32>
    %28 = vector.broadcast %27 : vector<1x8x8xf32> to vector<2x8x8xf32>
    %c0_13 = arith.constant 0 : index
    %c0_14 = arith.constant 0 : index
    %c0_15 = arith.constant 0 : index
    %29 = vector.load %arg4[%c0_13, %c0_14, %c0_15] : memref<1x8x1xf32, #tpu.memory_space<vmem>>, vector<1x8x1xf32>
    %30 = vector.shape_cast %29 : vector<1x8x1xf32> to vector<8x1xf32>
    %31 = vector.shape_cast %30 : vector<8x1xf32> to vector<1x8x1xf32>
    %32 = vector.shape_cast %31 : vector<1x8x1xf32> to vector<1x8x1xf32>
    %33 = vector.broadcast %32 : vector<1x8x1xf32> to vector<2x8x1xf32>
    %cst_16 = arith.constant 0.000000e+00 : f32
    %34 = vector.broadcast %cst_16 : f32 to vector<16x32xf32>
    %35 = vector.extract_strided_slice %23 {offsets = [0, 0], sizes = [16, 8], strides = [1, 1]} : vector<16x96xf32> to vector<16x8xf32>
    %36 = vector.shape_cast %35 : vector<16x8xf32> to vector<2x8x8xf32>
    %37 = arith.truncf %36 : vector<2x8x8xf32> to vector<2x8x8xbf16>
    %38 = vector.extract_strided_slice %23 {offsets = [0, 32], sizes = [16, 8], strides = [1, 1]} : vector<16x96xf32> to vector<16x8xf32>
    %39 = vector.shape_cast %38 : vector<16x8xf32> to vector<2x8x8xf32>
    %40 = arith.truncf %39 : vector<2x8x8xf32> to vector<2x8x8xbf16>
    %41 = vector.extract_strided_slice %23 {offsets = [0, 64], sizes = [16, 8], strides = [1, 1]} : vector<16x96xf32> to vector<16x8xf32>
    %42 = vector.shape_cast %41 : vector<16x8xf32> to vector<2x8x8xf32>
    %43 = arith.truncf %42 : vector<2x8x8xf32> to vector<2x8x8xbf16>
    "tpu.trace_start"() <{level = 10 : i32, message = "bqd,bkd->bqk"}> : () -> ()
    %cst_17 = arith.constant dense<0.000000e+00> : vector<2x8x8xf32>
    %44 = tpu.matmul %37, %40, %cst_17 {dimension_numbers = #tpu.dot_dimension_numbers<[2], [2], [1], [1], [0, 0, 0, 1, 1, 1], [0], [0]>} : vector<2x8x8xbf16>, vector<2x8x8xbf16>, vector<2x8x8xf32> -> vector<2x8x8xf32>
    "tpu.trace_stop"() : () -> ()
    %45 = arith.addf %44, %28 : vector<2x8x8xf32>
    %cst_18 = arith.constant dense<0xFF800000> : vector<2x8xf32>
    %46 = vector.multi_reduction <maximumf>, %45, %cst_18 [2] : vector<2x8x8xf32> to vector<2x8xf32>
    %47 = vector.shape_cast %46 : vector<2x8xf32> to vector<2x8x1xf32>
    %48 = vector.broadcast %47 : vector<2x8x1xf32> to vector<2x8x8xf32>
    %49 = arith.subf %45, %48 : vector<2x8x8xf32>
    %50 = math.exp %49 : vector<2x8x8xf32>
    %cst_19 = arith.constant dense<0.000000e+00> : vector<2x8xf32>
    %51 = vector.multi_reduction <add>, %50, %cst_19 [2] : vector<2x8x8xf32> to vector<2x8xf32>
    %52 = vector.shape_cast %51 : vector<2x8xf32> to vector<2x8x1xf32>
    %53 = tpu.reciprocal %52 {approx = true} : vector<2x8x1xf32> -> vector<2x8x1xf32>
    %54 = vector.broadcast %53 : vector<2x8x1xf32> to vector<2x8x8xf32>
    %55 = arith.mulf %50, %54 : vector<2x8x8xf32>
    %56 = vector.broadcast %33 : vector<2x8x1xf32> to vector<2x8x8xf32>
    %57 = arith.mulf %55, %56 : vector<2x8x8xf32>
    %58 = arith.truncf %57 : vector<2x8x8xf32> to vector<2x8x8xbf16>
    "tpu.trace_start"() <{level = 10 : i32, message = "bqk,bkd->bqd"}> : () -> ()
    %cst_20 = arith.constant dense<0.000000e+00> : vector<2x8x8xf32>
    %59 = tpu.matmul %58, %43, %cst_20 {dimension_numbers = #tpu.dot_dimension_numbers<[2], [1], [1], [2], [0, 0, 0, 1, 1, 2], [0], [0]>} : vector<2x8x8xbf16>, vector<2x8x8xbf16>, vector<2x8x8xf32> -> vector<2x8x8xf32>
    "tpu.trace_stop"() : () -> ()
    %60 = vector.shape_cast %59 : vector<2x8x8xf32> to vector<16x8xf32>
    %61 = arith.truncf %60 : vector<16x8xf32> to vector<16x8xbf16>
    %c0_21 = arith.constant 0 : index
    %c0_22 = arith.constant 0 : index
    %c0_23 = arith.constant 0 : index
    %c0_24 = arith.constant 0 : index
    %62 = vector.load %arg6[%c0_21, %c0_22, %c0_23, %c0_24] : memref<1x1x32x32xbf16, #tpu.memory_space<vmem>>, vector<1x1x8x32xbf16>
    %63 = vector.shape_cast %62 : vector<1x1x8x32xbf16> to vector<8x32xbf16>
    %cst_25 = arith.constant dense<0.000000e+00> : vector<16x32xf32>
    %64 = tpu.matmul %61, %63, %cst_25 {dimension_numbers = #tpu.dot_dimension_numbers<[1], [0], [0], [1], [0, 0, 1, 1], [], []>} : vector<16x8xbf16>, vector<8x32xbf16>, vector<16x32xf32> -> vector<16x32xf32>
    %65 = arith.addf %34, %64 : vector<16x32xf32>
    %66 = vector.extract_strided_slice %23 {offsets = [0, 8], sizes = [16, 8], strides = [1, 1]} : vector<16x96xf32> to vector<16x8xf32>
    %67 = vector.shape_cast %66 : vector<16x8xf32> to vector<2x8x8xf32>
    %68 = arith.truncf %67 : vector<2x8x8xf32> to vector<2x8x8xbf16>
    %69 = vector.extract_strided_slice %23 {offsets = [0, 40], sizes = [16, 8], strides = [1, 1]} : vector<16x96xf32> to vector<16x8xf32>
    %70 = vector.shape_cast %69 : vector<16x8xf32> to vector<2x8x8xf32>
    %71 = arith.truncf %70 : vector<2x8x8xf32> to vector<2x8x8xbf16>
    %72 = vector.extract_strided_slice %23 {offsets = [0, 72], sizes = [16, 8], strides = [1, 1]} : vector<16x96xf32> to vector<16x8xf32>
    %73 = vector.shape_cast %72 : vector<16x8xf32> to vector<2x8x8xf32>
    %74 = arith.truncf %73 : vector<2x8x8xf32> to vector<2x8x8xbf16>
    "tpu.trace_start"() <{level = 10 : i32, message = "bqd,bkd->bqk"}> : () -> ()
    %cst_26 = arith.constant dense<0.000000e+00> : vector<2x8x8xf32>
    %75 = tpu.matmul %68, %71, %cst_26 {dimension_numbers = #tpu.dot_dimension_numbers<[2], [2], [1], [1], [0, 0, 0, 1, 1, 1], [0], [0]>} : vector<2x8x8xbf16>, vector<2x8x8xbf16>, vector<2x8x8xf32> -> vector<2x8x8xf32>
    "tpu.trace_stop"() : () -> ()
    %76 = arith.addf %75, %28 : vector<2x8x8xf32>
    %cst_27 = arith.constant dense<0xFF800000> : vector<2x8xf32>
    %77 = vector.multi_reduction <maximumf>, %76, %cst_27 [2] : vector<2x8x8xf32> to vector<2x8xf32>
    %78 = vector.shape_cast %77 : vector<2x8xf32> to vector<2x8x1xf32>
    %79 = vector.broadcast %78 : vector<2x8x1xf32> to vector<2x8x8xf32>
    %80 = arith.subf %76, %79 : vector<2x8x8xf32>
    %81 = math.exp %80 : vector<2x8x8xf32>
    %cst_28 = arith.constant dense<0.000000e+00> : vector<2x8xf32>
    %82 = vector.multi_reduction <add>, %81, %cst_28 [2] : vector<2x8x8xf32> to vector<2x8xf32>
    %83 = vector.shape_cast %82 : vector<2x8xf32> to vector<2x8x1xf32>
    %84 = tpu.reciprocal %83 {approx = true} : vector<2x8x1xf32> -> vector<2x8x1xf32>
    %85 = vector.broadcast %84 : vector<2x8x1xf32> to vector<2x8x8xf32>
    %86 = arith.mulf %81, %85 : vector<2x8x8xf32>
    %87 = vector.broadcast %33 : vector<2x8x1xf32> to vector<2x8x8xf32>
    %88 = arith.mulf %86, %87 : vector<2x8x8xf32>
    %89 = arith.truncf %88 : vector<2x8x8xf32> to vector<2x8x8xbf16>
    "tpu.trace_start"() <{level = 10 : i32, message = "bqk,bkd->bqd"}> : () -> ()
    %cst_29 = arith.constant dense<0.000000e+00> : vector<2x8x8xf32>
    %90 = tpu.matmul %89, %74, %cst_29 {dimension_numbers = #tpu.dot_dimension_numbers<[2], [1], [1], [2], [0, 0, 0, 1, 1, 2], [0], [0]>} : vector<2x8x8xbf16>, vector<2x8x8xbf16>, vector<2x8x8xf32> -> vector<2x8x8xf32>
    "tpu.trace_stop"() : () -> ()
    %91 = vector.shape_cast %90 : vector<2x8x8xf32> to vector<16x8xf32>
    %92 = arith.truncf %91 : vector<16x8xf32> to vector<16x8xbf16>
    %c0_30 = arith.constant 0 : index
    %c0_31 = arith.constant 0 : index
    %c8 = arith.constant 8 : index
    %c0_32 = arith.constant 0 : index
    %93 = vector.load %arg6[%c0_30, %c0_31, %c8, %c0_32] : memref<1x1x32x32xbf16, #tpu.memory_space<vmem>>, vector<1x1x8x32xbf16>
    %94 = vector.shape_cast %93 : vector<1x1x8x32xbf16> to vector<8x32xbf16>
    %cst_33 = arith.constant dense<0.000000e+00> : vector<16x32xf32>
    %95 = tpu.matmul %92, %94, %cst_33 {dimension_numbers = #tpu.dot_dimension_numbers<[1], [0], [0], [1], [0, 0, 1, 1], [], []>} : vector<16x8xbf16>, vector<8x32xbf16>, vector<16x32xf32> -> vector<16x32xf32>
    %96 = arith.addf %65, %95 : vector<16x32xf32>
    %97 = vector.extract_strided_slice %23 {offsets = [0, 16], sizes = [16, 8], strides = [1, 1]} : vector<16x96xf32> to vector<16x8xf32>
    %98 = vector.shape_cast %97 : vector<16x8xf32> to vector<2x8x8xf32>
    %99 = arith.truncf %98 : vector<2x8x8xf32> to vector<2x8x8xbf16>
    %100 = vector.extract_strided_slice %23 {offsets = [0, 48], sizes = [16, 8], strides = [1, 1]} : vector<16x96xf32> to vector<16x8xf32>
    %101 = vector.shape_cast %100 : vector<16x8xf32> to vector<2x8x8xf32>
    %102 = arith.truncf %101 : vector<2x8x8xf32> to vector<2x8x8xbf16>
    %103 = vector.extract_strided_slice %23 {offsets = [0, 80], sizes = [16, 8], strides = [1, 1]} : vector<16x96xf32> to vector<16x8xf32>
    %104 = vector.shape_cast %103 : vector<16x8xf32> to vector<2x8x8xf32>
    %105 = arith.truncf %104 : vector<2x8x8xf32> to vector<2x8x8xbf16>
    "tpu.trace_start"() <{level = 10 : i32, message = "bqd,bkd->bqk"}> : () -> ()
    %cst_34 = arith.constant dense<0.000000e+00> : vector<2x8x8xf32>
    %106 = tpu.matmul %99, %102, %cst_34 {dimension_numbers = #tpu.dot_dimension_numbers<[2], [2], [1], [1], [0, 0, 0, 1, 1, 1], [0], [0]>} : vector<2x8x8xbf16>, vector<2x8x8xbf16>, vector<2x8x8xf32> -> vector<2x8x8xf32>
    "tpu.trace_stop"() : () -> ()
    %107 = arith.addf %106, %28 : vector<2x8x8xf32>
    %cst_35 = arith.constant dense<0xFF800000> : vector<2x8xf32>
    %108 = vector.multi_reduction <maximumf>, %107, %cst_35 [2] : vector<2x8x8xf32> to vector<2x8xf32>
    %109 = vector.shape_cast %108 : vector<2x8xf32> to vector<2x8x1xf32>
    %110 = vector.broadcast %109 : vector<2x8x1xf32> to vector<2x8x8xf32>
    %111 = arith.subf %107, %110 : vector<2x8x8xf32>
    %112 = math.exp %111 : vector<2x8x8xf32>
    %cst_36 = arith.constant dense<0.000000e+00> : vector<2x8xf32>
    %113 = vector.multi_reduction <add>, %112, %cst_36 [2] : vector<2x8x8xf32> to vector<2x8xf32>
    %114 = vector.shape_cast %113 : vector<2x8xf32> to vector<2x8x1xf32>
    %115 = tpu.reciprocal %114 {approx = true} : vector<2x8x1xf32> -> vector<2x8x1xf32>
    %116 = vector.broadcast %115 : vector<2x8x1xf32> to vector<2x8x8xf32>
    %117 = arith.mulf %112, %116 : vector<2x8x8xf32>
    %118 = vector.broadcast %33 : vector<2x8x1xf32> to vector<2x8x8xf32>
    %119 = arith.mulf %117, %118 : vector<2x8x8xf32>
    %120 = arith.truncf %119 : vector<2x8x8xf32> to vector<2x8x8xbf16>
    "tpu.trace_start"() <{level = 10 : i32, message = "bqk,bkd->bqd"}> : () -> ()
    %cst_37 = arith.constant dense<0.000000e+00> : vector<2x8x8xf32>
    %121 = tpu.matmul %120, %105, %cst_37 {dimension_numbers = #tpu.dot_dimension_numbers<[2], [1], [1], [2], [0, 0, 0, 1, 1, 2], [0], [0]>} : vector<2x8x8xbf16>, vector<2x8x8xbf16>, vector<2x8x8xf32> -> vector<2x8x8xf32>
    "tpu.trace_stop"() : () -> ()
    %122 = vector.shape_cast %121 : vector<2x8x8xf32> to vector<16x8xf32>
    %123 = arith.truncf %122 : vector<16x8xf32> to vector<16x8xbf16>
    %c0_38 = arith.constant 0 : index
    %c0_39 = arith.constant 0 : index
    %c16 = arith.constant 16 : index
    %c0_40 = arith.constant 0 : index
    %124 = vector.load %arg6[%c0_38, %c0_39, %c16, %c0_40] : memref<1x1x32x32xbf16, #tpu.memory_space<vmem>>, vector<1x1x8x32xbf16>
    %125 = vector.shape_cast %124 : vector<1x1x8x32xbf16> to vector<8x32xbf16>
    %cst_41 = arith.constant dense<0.000000e+00> : vector<16x32xf32>
    %126 = tpu.matmul %123, %125, %cst_41 {dimension_numbers = #tpu.dot_dimension_numbers<[1], [0], [0], [1], [0, 0, 1, 1], [], []>} : vector<16x8xbf16>, vector<8x32xbf16>, vector<16x32xf32> -> vector<16x32xf32>
    %127 = arith.addf %96, %126 : vector<16x32xf32>
    %128 = vector.extract_strided_slice %23 {offsets = [0, 24], sizes = [16, 8], strides = [1, 1]} : vector<16x96xf32> to vector<16x8xf32>
    %129 = vector.shape_cast %128 : vector<16x8xf32> to vector<2x8x8xf32>
    %130 = arith.truncf %129 : vector<2x8x8xf32> to vector<2x8x8xbf16>
    %131 = vector.extract_strided_slice %23 {offsets = [0, 56], sizes = [16, 8], strides = [1, 1]} : vector<16x96xf32> to vector<16x8xf32>
    %132 = vector.shape_cast %131 : vector<16x8xf32> to vector<2x8x8xf32>
    %133 = arith.truncf %132 : vector<2x8x8xf32> to vector<2x8x8xbf16>
    %134 = vector.extract_strided_slice %23 {offsets = [0, 88], sizes = [16, 8], strides = [1, 1]} : vector<16x96xf32> to vector<16x8xf32>
    %135 = vector.shape_cast %134 : vector<16x8xf32> to vector<2x8x8xf32>
    %136 = arith.truncf %135 : vector<2x8x8xf32> to vector<2x8x8xbf16>
    "tpu.trace_start"() <{level = 10 : i32, message = "bqd,bkd->bqk"}> : () -> ()
    %cst_42 = arith.constant dense<0.000000e+00> : vector<2x8x8xf32>
    %137 = tpu.matmul %130, %133, %cst_42 {dimension_numbers = #tpu.dot_dimension_numbers<[2], [2], [1], [1], [0, 0, 0, 1, 1, 1], [0], [0]>} : vector<2x8x8xbf16>, vector<2x8x8xbf16>, vector<2x8x8xf32> -> vector<2x8x8xf32>
    "tpu.trace_stop"() : () -> ()
    %138 = arith.addf %137, %28 : vector<2x8x8xf32>
    %cst_43 = arith.constant dense<0xFF800000> : vector<2x8xf32>
    %139 = vector.multi_reduction <maximumf>, %138, %cst_43 [2] : vector<2x8x8xf32> to vector<2x8xf32>
    %140 = vector.shape_cast %139 : vector<2x8xf32> to vector<2x8x1xf32>
    %141 = vector.broadcast %140 : vector<2x8x1xf32> to vector<2x8x8xf32>
    %142 = arith.subf %138, %141 : vector<2x8x8xf32>
    %143 = math.exp %142 : vector<2x8x8xf32>
    %cst_44 = arith.constant dense<0.000000e+00> : vector<2x8xf32>
    %144 = vector.multi_reduction <add>, %143, %cst_44 [2] : vector<2x8x8xf32> to vector<2x8xf32>
    %145 = vector.shape_cast %144 : vector<2x8xf32> to vector<2x8x1xf32>
    %146 = tpu.reciprocal %145 {approx = true} : vector<2x8x1xf32> -> vector<2x8x1xf32>
    %147 = vector.broadcast %146 : vector<2x8x1xf32> to vector<2x8x8xf32>
    %148 = arith.mulf %143, %147 : vector<2x8x8xf32>
    %149 = vector.broadcast %33 : vector<2x8x1xf32> to vector<2x8x8xf32>
    %150 = arith.mulf %148, %149 : vector<2x8x8xf32>
    %151 = arith.truncf %150 : vector<2x8x8xf32> to vector<2x8x8xbf16>
    "tpu.trace_start"() <{level = 10 : i32, message = "bqk,bkd->bqd"}> : () -> ()
    %cst_45 = arith.constant dense<0.000000e+00> : vector<2x8x8xf32>
    %152 = tpu.matmul %151, %136, %cst_45 {dimension_numbers = #tpu.dot_dimension_numbers<[2], [1], [1], [2], [0, 0, 0, 1, 1, 2], [0], [0]>} : vector<2x8x8xbf16>, vector<2x8x8xbf16>, vector<2x8x8xf32> -> vector<2x8x8xf32>
    "tpu.trace_stop"() : () -> ()
    %153 = vector.shape_cast %152 : vector<2x8x8xf32> to vector<16x8xf32>
    %154 = arith.truncf %153 : vector<16x8xf32> to vector<16x8xbf16>
    %c0_46 = arith.constant 0 : index
    %c0_47 = arith.constant 0 : index
    %c24 = arith.constant 24 : index
    %c0_48 = arith.constant 0 : index
    %155 = vector.load %arg6[%c0_46, %c0_47, %c24, %c0_48] : memref<1x1x32x32xbf16, #tpu.memory_space<vmem>>, vector<1x1x8x32xbf16>
    %156 = vector.shape_cast %155 : vector<1x1x8x32xbf16> to vector<8x32xbf16>
    %cst_49 = arith.constant dense<0.000000e+00> : vector<16x32xf32>
    %157 = tpu.matmul %154, %156, %cst_49 {dimension_numbers = #tpu.dot_dimension_numbers<[1], [0], [0], [1], [0, 0, 1, 1], [], []>} : vector<16x8xbf16>, vector<8x32xbf16>, vector<16x32xf32> -> vector<16x32xf32>
    %158 = arith.addf %127, %157 : vector<16x32xf32>
    %159 = vector.broadcast %7 : vector<1x32xf32> to vector<16x32xf32>
    %160 = arith.addf %158, %159 : vector<16x32xf32>
    %161 = arith.addf %3, %160 : vector<16x32xf32>
    %cst_50 = arith.constant dense<0.000000e+00> : vector<16xf32>
    %162 = vector.multi_reduction <add>, %161, %cst_50 [1] : vector<16x32xf32> to vector<16xf32>
    %163 = vector.shape_cast %162 : vector<16xf32> to vector<16x1xf32>
    %164 = arith.mulf %161, %161 : vector<16x32xf32>
    %cst_51 = arith.constant dense<0.000000e+00> : vector<16xf32>
    %165 = vector.multi_reduction <add>, %164, %cst_51 [1] : vector<16x32xf32> to vector<16xf32>
    %166 = vector.shape_cast %165 : vector<16xf32> to vector<16x1xf32>
    %cst_52 = arith.constant 3.125000e-02 : f32
    %167 = vector.broadcast %cst_52 : f32 to vector<16x1xf32>
    %168 = arith.mulf %163, %167 : vector<16x1xf32>
    %cst_53 = arith.constant 3.125000e-02 : f32
    %169 = vector.broadcast %cst_53 : f32 to vector<16x1xf32>
    %170 = arith.mulf %166, %169 : vector<16x1xf32>
    %171 = arith.mulf %168, %168 : vector<16x1xf32>
    %172 = arith.subf %170, %171 : vector<16x1xf32>
    %cst_54 = arith.constant 0.000000e+00 : f32
    %173 = vector.broadcast %cst_54 : f32 to vector<16x1xf32>
    %174 = arith.maximumf %172, %173 : vector<16x1xf32>
    %cst_55 = arith.constant 9.99999974E-6 : f32
    %175 = vector.broadcast %cst_55 : f32 to vector<16x1xf32>
    %176 = arith.addf %174, %175 : vector<16x1xf32>
    %177 = math.rsqrt %176 : vector<16x1xf32>
    %178 = vector.broadcast %168 : vector<16x1xf32> to vector<16x32xf32>
    %179 = arith.subf %161, %178 : vector<16x32xf32>
    %180 = vector.broadcast %177 : vector<16x1xf32> to vector<16x32xf32>
    %181 = arith.mulf %179, %180 : vector<16x32xf32>
    %182 = vector.broadcast %8 : vector<1x32xf32> to vector<16x32xf32>
    %183 = arith.mulf %181, %182 : vector<16x32xf32>
    %184 = vector.broadcast %9 : vector<1x32xf32> to vector<16x32xf32>
    %185 = arith.addf %183, %184 : vector<16x32xf32>
    %186 = arith.truncf %185 : vector<16x32xf32> to vector<16x32xbf16>
    %c0_56 = arith.constant 0 : index
    %c0_57 = arith.constant 0 : index
    %c0_58 = arith.constant 0 : index
    %c0_59 = arith.constant 0 : index
    %187 = vector.load %arg7[%c0_56, %c0_57, %c0_58, %c0_59] : memref<1x1x32x64xbf16, #tpu.memory_space<vmem>>, vector<1x1x32x64xbf16>
    %188 = vector.shape_cast %187 : vector<1x1x32x64xbf16> to vector<32x64xbf16>
    %cst_60 = arith.constant dense<0.000000e+00> : vector<16x64xf32>
    %189 = tpu.matmul %186, %188, %cst_60 {dimension_numbers = #tpu.dot_dimension_numbers<[1], [0], [0], [1], [0, 0, 1, 1], [], []>} : vector<16x32xbf16>, vector<32x64xbf16>, vector<16x64xf32> -> vector<16x64xf32>
    %190 = vector.broadcast %10 : vector<1x64xf32> to vector<16x64xf32>
    %191 = arith.addf %189, %190 : vector<16x64xf32>
    %cst_61 = arith.constant 0.000000e+00 : f32
    %192 = vector.broadcast %cst_61 : f32 to vector<16x64xf32>
    %193 = arith.cmpf oge, %191, %192 : vector<16x64xf32>
    %cst_62 = arith.constant 0.00999999977 : f32
    %194 = vector.broadcast %cst_62 : f32 to vector<16x64xf32>
    %195 = arith.mulf %194, %191 : vector<16x64xf32>
    %196 = arith.select %193, %191, %195 : vector<16x64xi1>, vector<16x64xf32>
    %197 = arith.truncf %196 : vector<16x64xf32> to vector<16x64xbf16>
    %c0_63 = arith.constant 0 : index
    %c0_64 = arith.constant 0 : index
    %c0_65 = arith.constant 0 : index
    %c0_66 = arith.constant 0 : index
    %198 = vector.load %arg8[%c0_63, %c0_64, %c0_65, %c0_66] : memref<1x1x64x32xbf16, #tpu.memory_space<vmem>>, vector<1x1x64x32xbf16>
    %199 = vector.shape_cast %198 : vector<1x1x64x32xbf16> to vector<64x32xbf16>
    %cst_67 = arith.constant dense<0.000000e+00> : vector<16x32xf32>
    %200 = tpu.matmul %197, %199, %cst_67 {dimension_numbers = #tpu.dot_dimension_numbers<[1], [0], [0], [1], [0, 0, 1, 1], [], []>} : vector<16x64xbf16>, vector<64x32xbf16>, vector<16x32xf32> -> vector<16x32xf32>
    %201 = vector.broadcast %11 : vector<1x32xf32> to vector<16x32xf32>
    %202 = arith.addf %200, %201 : vector<16x32xf32>
    %203 = vector.broadcast %12 : vector<1x32xf32> to vector<16x32xf32>
    %204 = arith.mulf %185, %203 : vector<16x32xf32>
    %cst_68 = arith.constant dense<0.000000e+00> : vector<16xf32>
    %205 = vector.multi_reduction <add>, %204, %cst_68 [1] : vector<16x32xf32> to vector<16xf32>
    %206 = vector.shape_cast %205 : vector<16xf32> to vector<16x1xf32>
    %207 = vector.broadcast %13 : vector<1x1xf32> to vector<16x1xf32>
    %208 = arith.addf %206, %207 : vector<16x1xf32>
    %cst_69 = arith.constant 0.000000e+00 : f32
    %209 = vector.broadcast %cst_69 : f32 to vector<16x1xf32>
    %210 = arith.cmpf oge, %208, %209 : vector<16x1xf32>
    %cst_70 = arith.constant 0.00999999977 : f32
    %211 = vector.broadcast %cst_70 : f32 to vector<16x1xf32>
    %212 = arith.mulf %211, %208 : vector<16x1xf32>
    %213 = arith.select %210, %208, %212 : vector<16x1xi1>, vector<16x1xf32>
    %214 = vector.broadcast %213 : vector<16x1xf32> to vector<16x32xf32>
    %215 = vector.broadcast %14 : vector<1x32xf32> to vector<16x32xf32>
    %216 = arith.mulf %214, %215 : vector<16x32xf32>
    %217 = vector.broadcast %15 : vector<1x32xf32> to vector<16x32xf32>
    %218 = arith.addf %216, %217 : vector<16x32xf32>
    %cst_71 = arith.constant 0.000000e+00 : f32
    %219 = vector.broadcast %cst_71 : f32 to vector<16x32xf32>
    %220 = arith.subf %219, %218 : vector<16x32xf32>
    %221 = math.exp %220 : vector<16x32xf32>
    %cst_72 = arith.constant 1.000000e+00 : f32
    %222 = vector.broadcast %cst_72 : f32 to vector<16x32xf32>
    %223 = arith.addf %222, %221 : vector<16x32xf32>
    %224 = tpu.reciprocal %223 {approx = true} : vector<16x32xf32> -> vector<16x32xf32>
    %225 = arith.mulf %185, %224 : vector<16x32xf32>
    %cst_73 = arith.constant 1.000000e+00 : f32
    %226 = vector.broadcast %cst_73 : f32 to vector<16x32xf32>
    %227 = arith.subf %226, %224 : vector<16x32xf32>
    %228 = arith.mulf %202, %227 : vector<16x32xf32>
    %229 = arith.addf %225, %228 : vector<16x32xf32>
    %cst_74 = arith.constant dense<0.000000e+00> : vector<16xf32>
    %230 = vector.multi_reduction <add>, %229, %cst_74 [1] : vector<16x32xf32> to vector<16xf32>
    %231 = vector.shape_cast %230 : vector<16xf32> to vector<16x1xf32>
    %232 = arith.mulf %229, %229 : vector<16x32xf32>
    %cst_75 = arith.constant dense<0.000000e+00> : vector<16xf32>
    %233 = vector.multi_reduction <add>, %232, %cst_75 [1] : vector<16x32xf32> to vector<16xf32>
    %234 = vector.shape_cast %233 : vector<16xf32> to vector<16x1xf32>
    %cst_76 = arith.constant 3.125000e-02 : f32
    %235 = vector.broadcast %cst_76 : f32 to vector<16x1xf32>
    %236 = arith.mulf %231, %235 : vector<16x1xf32>
    %cst_77 = arith.constant 3.125000e-02 : f32
    %237 = vector.broadcast %cst_77 : f32 to vector<16x1xf32>
    %238 = arith.mulf %234, %237 : vector<16x1xf32>
    %239 = arith.mulf %236, %236 : vector<16x1xf32>
    %240 = arith.subf %238, %239 : vector<16x1xf32>
    %cst_78 = arith.constant 0.000000e+00 : f32
    %241 = vector.broadcast %cst_78 : f32 to vector<16x1xf32>
    %242 = arith.maximumf %240, %241 : vector<16x1xf32>
    %cst_79 = arith.constant 9.99999974E-6 : f32
    %243 = vector.broadcast %cst_79 : f32 to vector<16x1xf32>
    %244 = arith.addf %242, %243 : vector<16x1xf32>
    %245 = math.rsqrt %244 : vector<16x1xf32>
    %246 = vector.broadcast %236 : vector<16x1xf32> to vector<16x32xf32>
    %247 = arith.subf %229, %246 : vector<16x32xf32>
    %248 = vector.broadcast %245 : vector<16x1xf32> to vector<16x32xf32>
    %249 = arith.mulf %247, %248 : vector<16x32xf32>
    %250 = vector.broadcast %16 : vector<1x32xf32> to vector<16x32xf32>
    %251 = arith.mulf %249, %250 : vector<16x32xf32>
    %252 = vector.broadcast %17 : vector<1x32xf32> to vector<16x32xf32>
    %253 = arith.addf %251, %252 : vector<16x32xf32>
    %c0_80 = arith.constant 0 : index
    %c0_81 = arith.constant 0 : index
    %254 = vector.load %arg11[%c0_80, %c0_81] : memref<16x32xf32, #tpu.memory_space<vmem>>, vector<16x32xf32>
    tpu.vector_store %arg11[%c0_80, %c0_81], %253 {strides = array<i32>} : memref<16x32xf32, #tpu.memory_space<vmem>>, vector<16x32xf32>,
    %c0_82 = arith.constant 0 : index
    %c0_83 = arith.constant 0 : index
    %c0_84 = arith.constant 0 : index
    %c0_85 = arith.constant 0 : index
    %255 = vector.load %arg10[%c0_82, %c0_83, %c0_84, %c0_85] : memref<1x1x16x32xf32, #tpu.memory_space<vmem>>, vector<1x1x16x32xf32>
    %256 = vector.shape_cast %255 : vector<1x1x16x32xf32> to vector<16x32xf32>
    %257 = vector.shape_cast %253 : vector<16x32xf32> to vector<1x1x16x32xf32>
    tpu.vector_store %arg10[%c0_82, %c0_83, %c0_84, %c0_85], %257 {strides = array<i32>} : memref<1x1x16x32xf32, #tpu.memory_space<vmem>>, vector<1x1x16x32xf32>,
    return
  }
  func.func @transform_0(%arg0: i32, %arg1: i32) -> (i32, i32) {
    %c0_i32 = arith.constant 0 : i32
    %c0_i32_0 = arith.constant 0 : i32
    %c0_i32_1 = arith.constant 0 : i32
    return %c0_i32, %c0_i32_0 : i32, i32
  }
  func.func @transform_1(%arg0: i32, %arg1: i32) -> (i32, i32, i32) {
    %c0_i32 = arith.constant 0 : i32
    %c0_i32_0 = arith.constant 0 : i32
    %c0_i32_1 = arith.constant 0 : i32
    return %arg0, %c0_i32, %c0_i32_0 : i32, i32, i32
  }
  func.func @transform_2(%arg0: i32, %arg1: i32) -> (i32, i32, i32) {
    %c0_i32 = arith.constant 0 : i32
    %c0_i32_0 = arith.constant 0 : i32
    %c0_i32_1 = arith.constant 0 : i32
    return %arg0, %c0_i32, %c0_i32_0 : i32, i32, i32
  }
  func.func @transform_3(%arg0: i32, %arg1: i32) -> (i32, i32, i32, i32) {
    %c0_i32 = arith.constant 0 : i32
    %c0_i32_0 = arith.constant 0 : i32
    %c0_i32_1 = arith.constant 0 : i32
    return %arg0, %arg1, %c0_i32, %c0_i32_0 : i32, i32, i32, i32
  }
  func.func @transform_4(%arg0: i32, %arg1: i32) -> (i32, i32, i32, i32) {
    %c0_i32 = arith.constant 0 : i32
    %c0_i32_0 = arith.constant 0 : i32
    %c0_i32_1 = arith.constant 0 : i32
    return %arg0, %arg1, %c0_i32, %c0_i32_0 : i32, i32, i32, i32
  }
  func.func @transform_5(%arg0: i32, %arg1: i32) -> (i32, i32, i32, i32) {
    %c0_i32 = arith.constant 0 : i32
    %c0_i32_0 = arith.constant 0 : i32
    %c0_i32_1 = arith.constant 0 : i32
    return %arg0, %arg1, %c0_i32, %c0_i32_0 : i32, i32, i32, i32
  }
  func.func @transform_6(%arg0: i32, %arg1: i32) -> (i32, i32, i32, i32) {
    %c0_i32 = arith.constant 0 : i32
    %c0_i32_0 = arith.constant 0 : i32
    %c0_i32_1 = arith.constant 0 : i32
    return %arg0, %arg1, %c0_i32, %c0_i32_0 : i32, i32, i32, i32
  }
  func.func @transform_7(%arg0: i32, %arg1: i32) -> (i32, i32, i32, i32) {
    %c0_i32 = arith.constant 0 : i32
    %c0_i32_0 = arith.constant 0 : i32
    %c0_i32_1 = arith.constant 0 : i32
    return %arg0, %arg1, %c0_i32, %c0_i32_0 : i32, i32, i32, i32
  }
  func.func @transform_8(%arg0: i32, %arg1: i32) -> (i32, i32, i32, i32) {
    %c0_i32 = arith.constant 0 : i32
    %c0_i32_0 = arith.constant 0 : i32
    %c0_i32_1 = arith.constant 0 : i32
    return %arg0, %arg1, %c0_i32, %c0_i32_0 : i32, i32, i32, i32
  }
}

</mosaic_0001>

<bundles_post_ra>
// kernel: tpu_custom_call.1
= control target key start
LH: loop header
LB: loop body
LE: loop exit
PB: predicated region body
PF: predicated region fallthrough
CT: control target
= control target key end

     0   :  { %s4183_s0 = inlined_call_operand.hbm [shape: f32[16,32], index: 0, kind: input, shape index: {}]   ;;  %s4184_s1 = inlined_call_operand.hbm [shape: f32[2,8,8], index: 1, kind: input, shape index: {}]   ;;  %s4185_s2 = inlined_call_operand.hbm [shape: f32[2,8,1], index: 2, kind: input, shape index: {}]   ;;  %s4186_s3 = inlined_call_operand.hbm [shape: bf16[2,2,32,96], index: 3, kind: input, shape index: {}]   ;;  %s4187_s4 = inlined_call_operand.hbm [shape: bf16[2,2,32,32], index: 4, kind: input, shape index: {}]   ;;  %s4188_s5 = inlined_call_operand.hbm [shape: bf16[2,2,32,64], index: 5, kind: input, shape index: {}]   ;;  %s4189_s6 = inlined_call_operand.hbm [shape: bf16[2,2,64,32], index: 6, kind: input, shape index: {}]   ;;  %s4190_s7 = inlined_call_operand.hbm [shape: f32[2,2,12,96], index: 7, kind: input, shape index: {}]   ;;  %s4191_s8 = inlined_call_operand.hbm [shape: f32[2,2,16,32], index: 8, kind: output, shape index: {}]  }
   0x1   :  { %4231 = sst [smem:[#allocation37_spill]] %s4183_s0 }
   0x2   :  { %4232 = sst [smem:[#allocation38_spill]] %s4184_s1 }
   0x3   :  { %4233 = sst [smem:[#allocation39_spill]] %s4185_s2 }
   0x4   :  { %4234 = sst [smem:[#allocation40_spill]] %s4186_s3 }
   0x5   :  { %4235 = sst [smem:[#allocation41_spill]] %s4187_s4 }
   0x6   :  { %4236 = sst [smem:[#allocation42_spill]] %s4188_s5 }
   0x7   :  { %4237 = sst [smem:[#allocation43_spill]] %s4189_s6 }
   0x8   :  { %4238 = sst [smem:[#allocation44_spill]] %s4190_s7 }
   0x9   :  { %4239 = sst [smem:[#allocation45_spill]] %s4191_s8 }
   0xa   :  { %13 = vsyncpa [#allocation4], 0 }
   0xb   :  { %14 = vsyncpa [#allocation7], 0 }
   0xc   :  { %16 = vsyncpa [#allocation7 + $0x1], 0 }
   0xd   :  { %17 = vsyncpa [#allocation10], 0 }
   0xe   :  { %19 = vsyncpa [#allocation10 + $0x1], 0 }
   0xf   :  { %20 = vsyncpa [#allocation13], 0 }
  0x10   :  { %22 = vsyncpa [#allocation13 + $0x1], 0 }
  0x11   :  { %23 = vsyncpa [#allocation16], 0 }
  0x12   :  { %25 = vsyncpa [#allocation16 + $0x1], 0 }
  0x13   :  { %26 = vsyncpa [#allocation5], 0 }
  0x14   :  { %28 = vsyncpa [#allocation5 + $0x1], 0  ;;  %s3301_s27 = smov 0   ;;  %s3303_s28 = smov 0  }
  0x15   :  { %s3305_s29 = smov 0   ;;  %s3307_s30 = smov 0  }
  0x16   :  { %s3309_s9 = smov 0   ;;  %s3311_s10 = smov 0  }
  0x17   :  { %s3313_s11 = smov 0   ;;  %s3315_s12 = smov 0  }
  0x18   :  { %s3317_s13 = smov 0   ;;  %s3319_s14 = smov 0  }
  0x19   :  { %s3321_s15 = smov 0  }
  0x1a LB: > { %4240 = sst [smem:[#allocation24_spill]] %s3185_s27  ;;  %s2352_s16 = sadd.s32 4294967294, %s3225_s15   ;;  %s3225_s15 = sphi %s3321_s15, %s34_s15   ;;  %s3221_s14 = sphi %s3319_s14, %s4313_s14   ;;  %s3217_s13 = sphi %s3317_s13, %s4318_s13   ;;  %s3213_s12 = sphi %s3315_s12, %s4311_s12   ;;  %s3209_s11 = sphi %s3313_s11, %s4310_s11   ;;  %s3205_s10 = sphi %s3311_s10, %s4309_s10   ;;  %s3201_s9 = sphi %s3309_s9, %s4317_s9   ;;  %s3197_s30 = sphi %s3307_s30, %s4316_s30   ;;  %s3193_s29 = sphi %s3305_s29, %s4307_s29   ;;  %s3189_s28 = sphi %s3303_s28, %s4315_s28   ;;  %s3185_s27 = sphi %s3301_s27, %s4314_s27  }
  0x1b   : > { %4241 = sst [smem:[#allocation25_spill]] %s3193_s29  ;;  %s43_s17 = sadd.s32 1, %s3217_s13 }
  0x1c   : > { %4242 = sst [smem:[#allocation26_spill]] %s3205_s10  ;;  %p44_p0 = scmp.ge.s32.totalorder %s43_s17, 2 }
  0x1d   : > { %4243 = sst [smem:[#allocation27_spill]] %s3209_s11  ;;  %s46_s18 = sadd.s32 1, %s3221_s14 }
  0x1e   : > { %4244 = sst [smem:[#allocation28_spill]] %s3213_s12  ;;  %s74_s19 = sadd.s32 1, %s3205_s10 }
  0x1f   : > { %4245 = sst [smem:[#allocation29_spill]] %s3217_s13  ;;  %p81_p1 = scmp.ne.s32.totalorder %s3205_s10, %s3201_s9 }
  0x20   : > { %4246 = sst [smem:[#allocation30_spill]] %s3221_s14  ;;  %s4320_s17 = smov (%p44_p0, %s43_s17), 0 }
  0x21   : > { %4247 = sst [smem:[#allocation31_spill]] %s3225_s15  ;;  %s4322_s18 = smov (!%p44_p0, %s46_s18), %s3221_s14 }
  0x22   : > { %4248 = sst [smem:[#allocation32_spill]] %s4320_s17  ;;  %p82_p2 = scmp.eq.s32.totalorder %s3225_s15, 0 }
  0x23   : > { %p48_p4 = scmp.ge.s32.totalorder %s4322_s18, 2  ;;  %s124_s20 = ssub.s32 %s3217_s13, %s4320_s17 }
  0x24   : > { %p3372_p5 = por %p82_p2, %p81_p1  ;;  %s128_s22 = sadd.s32 1, %s3193_s29 }
  0x25   : > { %s4324_s18 = smov (%p48_p4, %s4322_s18), 0  ;;  %p4199_p6 = scmp.ne.s32.totalorder %s3193_s29, %s3189_s28 }
  0x26   : > { %4250 = sst [smem:[#allocation33_spill]] %s4324_s18  ;;  %p4200_p7 = scmp.ne.s32.totalorder %s3189_s28, %s3185_s27 }
  0x27   : > { %s71_s23 = ssub.s32 %s3221_s14, %s4324_s18  ;;  %p285_p8 = scmp.eq.s32.totalorder %s2352_s16, 3 }
  0x28   : > { %p72_p9 = scmp.eq.s32.totalorder %s71_s23, 0  ;;  %s125_s24 = sor.u32 %s124_s20, %s71_s23 }
  0x29   : > { %p126_p10 = scmp.eq.s32.totalorder %s125_s24, 0  ;;  %p3390_p11 = por %p4199_p6, %p82_p2 }
  0x2a   : > { %s3395_s26 = scalar_select %p72_p9, %s3205_s10, %s74_s19  }
  0x2b   : > { %s3398_s17 = scalar_select %p126_p10, %s3193_s29, %s128_s22  }
  0x2c   : > { %4252 = sst [smem:[#allocation34_spill]] %s3395_s26  ;;  %p3403_p12 = por %p285_p8, %p4200_p7 }
  0x2d   : > { %4253 = sst [smem:[#allocation35_spill]] %s3398_s17  ;;  %p4201_p13 = scmp.lt.s32.totalorder %s3225_s15, 4 }
  0x2e   : > { %s4254_s8 = scalar_select %p3403_p12, 1, 0 }
  0x2f   : > { %s3409_s16 = sand.u32 1, %s3225_s15   ;;  %s320_s20 = sand.u32 1, %s3205_s10  }
  0x30   : > { %4255 = sst [smem:[#allocation36_spill]] %s4254_s8  ;;  %s3412_s23 = sshll.u32 %s320_s20, 3 }
  0x31   : > { %s2357_s24 = sshll.u32 %s3221_s14, 7  ;;  %s4256_s1 = sld [smem:[#allocation38_spill]] }
  0x32   : > { %s322_s22 = scalar_lea.vmem [#allocation6], %s3412_s23  ;;  %p3425_p0 = pnand %p4201_p13, %p3372_p5 }
  0x33   : > { %s329_s26 = sshll.u32 %s322_s22, 4  ;;  %s4258_s2 = sld [smem:[#allocation39_spill]]  ;;  %s3429_s26 = int_to_ptr.vmem [resolvable:$true] %s329_s26 }
  0x34   : > { %s4257_s17 = scalar_select %p3425_p0, 1, 0 }
  0x35   : > { %s4202_s10 = scalar_lea.sflag [#allocation7], %s3409_s16  ;;  %p4203_p2 = pneg %p3425_p0 }
  0x37   : > { %s3418_s19 = scalar_lea.hbm %s4256_s1, %s2357_s24  ;;  %s2854_s11 = scalar_lea.hbm %s4256_s1, 256 }
  0x38   : > { %s2849_s8 = scalar_lea.hbm %s3418_s19, 128  ;;  %p2855_p8 = scmp.lt.u32.totalorder %s3418_s19, %s4256_s1 }
  0x39   : > { %s3434_s18 = scalar_lea.hbm %s4258_s2, %s2357_s24  ;;  %p2850_p1 = scmp.ne.s32.totalorder %s3418_s19, %s2849_s8 }
  0x3a   : > { %p2856_p9 = scmp.lt.u32.totalorder %s2854_s11, %s2849_s8  ;;  %p2858_p6 = scmp.lt.u32.totalorder %s2849_s8, %s3418_s19 }
  0x3b   : > { %p2852_p4 = pnand %p4203_p2, %p2850_p1 }
  0x3c   : > { %p2857_p10 = por %p2856_p9, %p2855_p8 }
  0x3d   : > { %p2853_p5 = pneg %p2852_p4 }
  0x3e   : > { %p2859_p7 = por %p2858_p6, %p2857_p10 }
  0x40   : > { %p2860_p3 = pnand %p2859_p7, %p2853_p5 }
  0x42   : > { %2863 = shalt.err (!%p2860_p3)
}
  0x43   : > { %s2864_s24 = scalar_lea.vmem %s3429_s26, 128  ;;  %s3227_s20 = smov [#allocation6]  }
  0x44   : > { %p2865_p1 = scmp.ne.s32.totalorder %s3429_s26, %s2864_s24  ;;  %s2869_s12 = sshll.u32 %s3227_s20, 4  ;;  %s2870_s12 = int_to_ptr.vmem [resolvable:$false] %s2869_s12 }
  0x45   : > { %s2871_s6 = scalar_lea.vmem %s2870_s12, 256  ;;  %p2872_p12 = scmp.lt.s32.totalorder %s3429_s26, %s2870_s12 }
  0x46   : > { %p2867_p4 = pnand %p2865_p1, %p4203_p2  ;;  %p2873_p8 = scmp.lt.s32.totalorder %s2871_s6, %s2864_s24 }
  0x48   : > { %p2868_p13 = pneg %p2867_p4  ;;  %p2874_p9 = por %p2873_p8, %p2872_p12 }
  0x4a   : > { %p2875_p6 = pnand %p2874_p9, %p2868_p13 }
  0x4c   : > { %2878 = shalt.err (!%p2875_p6)
}
  0x4d   : > { %2654 = dma.hbm_to_vmem [thread:$0]  (!%p3425_p0), %s3418_s19, 128, %s3429_s26, %s4202_s10  }
  0x4e   : > { %p4259_p3 = scmp.lt.s32.totalorder %s3225_s15, 4  ;;  %s3473_s8 = sand.u32 1, %s3193_s29  }
  0x4f   : > { %s3476_s11 = sshll.u32 %s3473_s8, 4  ;;  %s2361_s21 = sshll.u32 %s3217_s13, 2 }
  0x50   : > { %p3468_p7 = pnand %p4259_p3, %p3390_p11  ;;  %s2362_s22 = sshll.u32 %s3221_s14, 3 }
  0x51   : > { %s358_s24 = scalar_lea.vmem [#allocation9], %s3476_s11  ;;  %s364_s12 = sadd.s32 %s2362_s22, %s2361_s21 }
  0x52   : > { %s4260_s7 = scalar_select %p3468_p7, 1, 0 }
  0x53   : > { %s367_s20 = sshll.u32 %s358_s24, 4  ;;  %s3483_s25 = sshll.u32 %s364_s12, 6  ;;  %s3481_s20 = int_to_ptr.vmem [resolvable:$true] %s367_s20 }
  0x54   : > { %s4261_s3 = sld [smem:[#allocation40_spill]]  ;;  %p3496_p12 = pneg %p3468_p7 }
  0x56   : > { %s4262_s21 = scalar_select %p3496_p12, 1, 0 }
  0x5a   : > { %s3489_s6 = scalar_lea.hbm %s4261_s3, %s3483_s25  ;;  %s2884_s12 = scalar_lea.hbm %s4261_s3, 1024 }
  0x5b   : > { %s2879_s1 = scalar_lea.hbm %s3489_s6, 256  ;;  %p2885_p10 = scmp.lt.u32.totalorder %s3489_s6, %s4261_s3 }
  0x5c   : > { %p2880_p11 = scmp.ne.s32.totalorder %s3489_s6, %s2879_s1  ;;  %p2886_p1 = scmp.lt.u32.totalorder %s2884_s12, %s2879_s1 }
  0x5d   : > { %p2888_p8 = scmp.lt.u32.totalorder %s2879_s1, %s3489_s6 }
  0x5e   : > { %p2882_p13 = pnand %p3496_p12, %p2880_p11  ;;  %p2887_p4 = por %p2886_p1, %p2885_p10 }
  0x60   : > { %p2883_p5 = pneg %p2882_p13  ;;  %p2889_p9 = por %p2888_p8, %p2887_p4 }
  0x62   : > { %p2890_p6 = pnand %p2889_p9, %p2883_p5 }
  0x64   : > { %2893 = shalt.err (!%p2890_p6)
}
  0x65   : > { %s2894_s10 = scalar_lea.vmem %s3481_s20, 256  ;;  %s3228_s22 = smov [#allocation9]  }
  0x66   : > { %p2895_p3 = scmp.ne.s32.totalorder %s3481_s20, %s2894_s10  ;;  %s2899_s24 = sshll.u32 %s3228_s22, 4  ;;  %s2900_s24 = int_to_ptr.vmem [resolvable:$false] %s2899_s24 }
  0x67   : > { %s2901_s26 = scalar_lea.vmem %s2900_s24, 512  ;;  %p2902_p2 = scmp.lt.s32.totalorder %s3481_s20, %s2900_s24 }
  0x68   : > { %p2897_p11 = pnand %p2895_p3, %p3496_p12  ;;  %p2903_p0 = scmp.lt.s32.totalorder %s2901_s26, %s2894_s10 }
  0x6a   : > { %p2898_p13 = pneg %p2897_p11  ;;  %p2904_p10 = por %p2903_p0, %p2902_p2 }
  0x6c   : > { %p2905_p1 = pnand %p2904_p10, %p2898_p13 }
  0x6e   : > { %2908 = shalt.err (!%p2905_p1)
}
  0x6f   : > { %s4211_s1 = smov 64   ;;  %s4213_s12 = smov 4  }
  0x70   : > { %s4263_s19 = scalar_lea.sflag [#allocation10], %s3409_s16  ;;  %s4264_s5 = sld [smem:[#allocation42_spill]] }
  0x71   : > { %2660 = dma.hbm_to_vmem [thread:$0]  (!%p3468_p7), %s3489_s6, 256, %s3481_s20, %s4263_s19, %s4211_s1, %s4211_s1, %s4213_s12  }
  0x72   : > { %s404_s26 = scalar_lea.vmem [#allocation12], %s3476_s11  ;;  %s4210_s14 = scalar_lea.sflag [#allocation13], %s3409_s16 }
  0x73   : > { %s413_s3 = sshll.u32 %s404_s26, 4  ;;  %s3531_s3 = int_to_ptr.vmem [resolvable:$true] %s413_s3 }
  0x76   : > { %s3528_s24 = scalar_lea.hbm %s4264_s5, %s3483_s25  ;;  %s2914_s19 = scalar_lea.hbm %s4264_s5, 1024 }
  0x77   : > { %s2909_s13 = scalar_lea.hbm %s3528_s24, 256  ;;  %p2915_p4 = scmp.lt.u32.totalorder %s3528_s24, %s4264_s5 }
  0x78   : > { %p2910_p0 = scmp.ne.s32.totalorder %s3528_s24, %s2909_s13  ;;  %p2916_p8 = scmp.lt.u32.totalorder %s2914_s19, %s2909_s13 }
  0x79   : > { %p2918_p6 = scmp.lt.u32.totalorder %s2909_s13, %s3528_s24 }
  0x7a   : > { %p2912_p2 = pnand %p2910_p0, %p3496_p12  ;;  %p2917_p9 = por %p2916_p8, %p2915_p4 }
  0x7c   : > { %p2913_p5 = pneg %p2912_p2  ;;  %p2919_p3 = por %p2918_p6, %p2917_p9 }
  0x7e   : > { %p2920_p11 = pnand %p2919_p3, %p2913_p5 }
  0x80   : > { %2923 = shalt.err (!%p2920_p11)
}
  0x81   : > { %s2924_s26 = scalar_lea.vmem %s3531_s3, 256  ;;  %s3231_s20 = smov [#allocation12]  }
  0x82   : > { %p2925_p13 = scmp.ne.s32.totalorder %s3531_s3, %s2924_s26  ;;  %s2929_s6 = sshll.u32 %s3231_s20, 4  ;;  %s2930_s6 = int_to_ptr.vmem [resolvable:$false] %s2929_s6 }
  0x83   : > { %s2931_s10 = scalar_lea.vmem %s2930_s6, 512  ;;  %p2932_p0 = scmp.lt.s32.totalorder %s3531_s3, %s2930_s6 }
  0x84   : > { %p2927_p10 = pnand %p2925_p13, %p3496_p12  ;;  %p2933_p2 = scmp.lt.s32.totalorder %s2931_s10, %s2924_s26 }
  0x86   : > { %p2928_p1 = pneg %p2927_p10  ;;  %p2934_p4 = por %p2933_p2, %p2932_p0 }
  0x88   : > { %p2935_p8 = pnand %p2934_p4, %p2928_p1 }
  0x8a   : > { %2938 = shalt.err (!%p2935_p8)
}
  0x8b   : > { %2666 = dma.hbm_to_vmem [thread:$0]  (!%p3468_p7), %s3528_s24, 256, %s3531_s3, %s4210_s14, %s4211_s1, %s4211_s1, %s4213_s12  }
  0x8c   : > { %s3561_s13 = sadd.s32 4294967295, %s3225_s15   ;;  %p2353_p5 = scmp.ge.s32.totalorder %s3225_s15, 1 }
  0x8d   : > { %p4219_p9 = scmp.eq.s32.totalorder %s3561_s13, 0  ;;  %p279_p6 = scmp.eq.s32.totalorder %s3561_s13, 3 }
  0x8e   : > { %p292_p3 = scmp.lt.s32.totalorder %s3225_s15, 5  ;;  %p4265_p11 = scmp.ne.s32.totalorder %s3201_s9, %s3197_s30 }
  0x8f   : > { %p4267_p10 = scmp.ne.s32.totalorder %s3189_s28, %s3185_s27  ;;  %p4269_p0 = scmp.ne.s32.totalorder %s3193_s29, %s3189_s28 }
  0x90   : > { %p3572_p13 = por %p4219_p9, %p4265_p11  ;;  %p3592_p4 = pnand %p2353_p5, %p292_p3 }
  0x91   : > { %p3581_p1 = por %p4267_p10, %p4219_p9  ;;  %p3588_p2 = por %p279_p6, %p4269_p0 }
  0x92   : > { %s4266_s19 = scalar_select %p3572_p13, 1, 0 }
  0x93   : > { %s4268_s3 = scalar_select %p3581_p1, 1, 0 }
  0x94   : > { %s4270_s24 = scalar_select %p3588_p2, 1, 0 }
  0x95   : > { %s4271_s22 = scalar_select %p3592_p4, 1, 0 }
  0x96   : > { %p2647_p8 = pneg %p3592_p4  ;;  %s3232_s30 = smov [#allocation3]  }
  0x97   : > { %s304_s26 = sshll.u32 %s3232_s30, 4  ;;  %s340_s6 = scalar_lea.vmem [#allocation8], %s3412_s23  ;;  %s305_s26 = int_to_ptr.vmem [resolvable:$true] %s304_s26 }
  0x98   : > { %p3600_p11 = pnand %p2647_p8, %p4219_p9  ;;  %s347_s10 = sshll.u32 %s340_s6, 4  ;;  %s3605_s10 = int_to_ptr.vmem [resolvable:$true] %s347_s10 }
  0x99   : > { %s4273_s4 = sld [smem:[#allocation41_spill]]  ;;  %s4274_s0 = sld [smem:[#allocation37_spill]] }
  0x9a   : > { %p2941_p6 = pneg %p3600_p11 }
  0x9f   : > { %s3611_s12 = scalar_lea.hbm %s4273_s4, %s3483_s25  ;;  %s2939_s30 = scalar_lea.hbm %s4274_s0, 256 }
  0xa0   : > { %p2940_p5 = scmp.ne.s32.totalorder %s4274_s0, %s2939_s30  ;;  %p2946_p0 = scmp.lt.u32.totalorder %s2939_s30, %s4274_s0 }
  0xa2   : > { %p2942_p3 = pnand %p2941_p6, %p2940_p5 }
  0xa4   : > { %p2943_p10 = pneg %p2942_p3 }
  0xa6   : > { %p2948_p8 = pnand %p2946_p0, %p2943_p10 }
  0xa8   : > { %2951 = shalt.err (!%p2948_p8)
}
  0xa9   : > { %s2952_s14 = scalar_lea.vmem %s305_s26, 256  ;;  %p2960_p13 = scmp.lt.s32.totalorder %s305_s26, %s305_s26 }
  0xaa   : > { %p2953_p9 = scmp.ne.s32.totalorder %s305_s26, %s2952_s14  ;;  %p2961_p4 = scmp.lt.s32.totalorder %s2952_s14, %s2952_s14 }
  0xac   : > { %p2955_p2 = pnand %p2953_p9, %p2941_p6  ;;  %p2962_p7 = por %p2961_p4, %p2960_p13 }
  0xae   : > { %p2956_p1 = pneg %p2955_p2 }
  0xb0   : > { %p2963_p12 = pnand %p2962_p7, %p2956_p1 }
  0xb2   : > { %2966 = shalt.err (!%p2963_p12)
}
  0xb3   : > { %s4228_s5 = smov 128   ;;  %s4229_s27 = smov 8  }
  0xb4   : > { %2650 = dma.hbm_to_vmem [thread:$0]  (!%p3600_p11), %s4274_s0, 256, %s305_s26, [#allocation4], %s4228_s5, %s4228_s5, %s4229_s27  }
  0xb5   : > { %s2967_s25 = scalar_lea.hbm %s3434_s18, 128  ;;  %p4275_p7 = scmp.ne.s32.totalorder %s4257_s17, 0 }
  0xb6   : > { %p2968_p9 = scmp.ne.s32.totalorder %s3434_s18, %s2967_s25  ;;  %s2972_s23 = scalar_lea.hbm %s4258_s2, 256 }
  0xb7   : > { %p4276_p12 = pneg %p4275_p7  ;;  %p2973_p2 = scmp.lt.u32.totalorder %s3434_s18, %s4258_s2 }
  0xb8   : > { %p2974_p4 = scmp.lt.u32.totalorder %s2972_s23, %s2967_s25  ;;  %p2976_p6 = scmp.lt.u32.totalorder %s2967_s25, %s3434_s18 }
  0xb9   : > { %p2970_p13 = pnand %p2968_p9, %p4276_p12 }
  0xba   : > { %p2975_p5 = por %p2974_p4, %p2973_p2 }
  0xbb   : > { %p2971_p1 = pneg %p2970_p13 }
  0xbc   : > { %p2977_p3 = por %p2976_p6, %p2975_p5 }
  0xbe   : > { %p2978_p10 = pnand %p2977_p3, %p2971_p1 }
  0xc0   : > { %2981 = shalt.err (!%p2978_p10)
}
  0xc1   : > { %s2982_s26 = scalar_lea.vmem %s3605_s10, 128  ;;  %p4277_p0 = pmov %p4276_p12 }
  0xc2   : > { %p2983_p11 = scmp.ne.s32.totalorder %s3605_s10, %s2982_s26  ;;  %s3235_s20 = smov [#allocation8]  }
  0xc3   : > { %s2987_s29 = sshll.u32 %s3235_s20, 4  ;;  %s2988_s29 = int_to_ptr.vmem [resolvable:$false] %s2987_s29 }
  0xc4   : > { %p2985_p8 = pnand %p2983_p11, %p4277_p0  ;;  %s2989_s15 = scalar_lea.vmem %s2988_s29, 256 }
  0xc5   : > { %p2990_p12 = scmp.lt.s32.totalorder %s3605_s10, %s2988_s29  ;;  %p2991_p13 = scmp.lt.s32.totalorder %s2989_s15, %s2982_s26 }
  0xc6   : > { %p2986_p9 = pneg %p2985_p8 }
  0xc7   : > { %p2992_p2 = por %p2991_p13, %p2990_p12 }
  0xc9   : > { %p2993_p4 = pnand %p2992_p2, %p2986_p9 }
  0xcb   : > { %2996 = shalt.err (!%p2993_p4)
}
  0xcc   : > { %s4278_s25 = scalar_lea.sflag [#allocation7], %s3409_s16  ;;  %s381_s1 = scalar_lea.vmem [#allocation11], %s3476_s11 }
  0xcd   : > { %2657 = dma.hbm_to_vmem [thread:$0]  (!%p4275_p7), %s3434_s18, 128, %s3605_s10, %s4278_s25  }
  0xce   : > { %s390_s30 = sshll.u32 %s381_s1, 4  ;;  %s2372_s23 = sshll.u32 %s3473_s8, 5  ;;  %s3659_s30 = int_to_ptr.vmem [resolvable:$true] %s390_s30 }
  0xcf   : > { %s2997_s6 = scalar_lea.hbm %s3611_s12, 256  ;;  %p4279_p5 = scmp.ne.s32.totalorder %s4262_s21, 0 }
  0xd0   : > { %p2998_p1 = scmp.ne.s32.totalorder %s3611_s12, %s2997_s6  ;;  %s3002_s26 = scalar_lea.hbm %s4273_s4, 1024 }
  0xd1   : > { %p3003_p10 = scmp.lt.u32.totalorder %s3611_s12, %s4273_s4  ;;  %p3004_p11 = scmp.lt.u32.totalorder %s3002_s26, %s2997_s6 }
  0xd2   : > { %p3000_p6 = pnand %p2998_p1, %p4279_p5  ;;  %p3006_p0 = scmp.lt.u32.totalorder %s2997_s6, %s3611_s12 }
  0xd3   : > { %p3005_p7 = por %p3004_p11, %p3003_p10 }
  0xd4   : > { %p3001_p3 = pneg %p3000_p6 }
  0xd5   : > { %p3007_p8 = por %p3006_p0, %p3005_p7 }
  0xd7   : > { %p3008_p9 = pnand %p3007_p8, %p3001_p3 }
  0xd9   : > { %3011 = shalt.err (!%p3008_p9)
}
  0xda   : > { %s3012_s18 = scalar_lea.vmem %s3659_s30, 256  ;;  %s3236_s10 = smov [#allocation11]  }
  0xdb   : > { %p3013_p12 = scmp.ne.s32.totalorder %s3659_s30, %s3012_s18  ;;  %s3017_s15 = sshll.u32 %s3236_s10, 4  ;;  %s3018_s15 = int_to_ptr.vmem [resolvable:$false] %s3017_s15 }
  0xdc   : > { %s3019_s25 = scalar_lea.vmem %s3018_s15, 512  ;;  %p3020_p4 = scmp.lt.s32.totalorder %s3659_s30, %s3018_s15 }
  0xdd   : > { %p3015_p13 = pnand %p3013_p12, %p4279_p5  ;;  %p3021_p1 = scmp.lt.s32.totalorder %s3019_s25, %s3012_s18 }
  0xdf   : > { %p3016_p2 = pneg %p3015_p13  ;;  %p3022_p6 = por %p3021_p1, %p3020_p4 }
  0xe1   : > { %p3023_p10 = pnand %p3022_p6, %p3016_p2 }
  0xe3   : > { %3026 = shalt.err (!%p3023_p10)
}
  0xe4   : > { %p4280_p3 = scmp.ne.s32.totalorder %s4260_s7, 0  ;;  %s4281_s1 = smov 4  }
  0xe5   : > { %s4282_s6 = smov 64   ;;  %s4283_s17 = scalar_lea.sflag [#allocation10], %s3409_s16 }
  0xe6   : > { %s4284_s14 = sld [smem:[#allocation29_spill]]  ;;  %s4285_s26 = sld [smem:[#allocation30_spill]] }
  0xe7   : > { %2663 = dma.hbm_to_vmem [thread:$0]  (!%p4280_p3), %s3611_s12, 256, %s3659_s30, %s4283_s17, %s4282_s6, %s4282_s6, %s4281_s1  }
  0xe8   : > { %s427_s10 = scalar_lea.vmem [#allocation14], %s2372_s23  ;;  %s4286_s0 = sld [smem:[#allocation43_spill]] }
  0xe9   : > { %s436_s15 = sshll.u32 %s427_s10, 4  ;;  %s3691_s15 = int_to_ptr.vmem [resolvable:$true] %s436_s15 }
  0xec   : > { %s2373_s20 = sshll.u32 %s4284_s14, 3  ;;  %s2374_s29 = sshll.u32 %s4285_s26, 4 }
  0xed   : > { %s433_s18 = sadd.s32 %s2374_s29, %s2373_s20 }
  0xee   : > { %s2375_s25 = sshll.u32 %s433_s18, 6  ;;  %s3032_s23 = scalar_lea.hbm %s4286_s0, 2048 }
  0xef   : > { %s3696_s2 = scalar_lea.hbm %s4286_s0, %s2375_s25 }
  0xf0   : > { %s3027_s4 = scalar_lea.hbm %s3696_s2, 512  ;;  %p3033_p8 = scmp.lt.u32.totalorder %s3696_s2, %s4286_s0 }
  0xf1   : > { %p3028_p11 = scmp.ne.s32.totalorder %s3696_s2, %s3027_s4  ;;  %p3034_p9 = scmp.lt.u32.totalorder %s3032_s23, %s3027_s4 }
  0xf2   : > { %p3036_p13 = scmp.lt.u32.totalorder %s3027_s4, %s3696_s2 }
  0xf3   : > { %p3030_p7 = pnand %p3028_p11, %p4279_p5  ;;  %p3035_p12 = por %p3034_p9, %p3033_p8 }
  0xf5   : > { %p3031_p0 = pneg %p3030_p7  ;;  %p3037_p2 = por %p3036_p13, %p3035_p12 }
  0xf7   : > { %p3038_p4 = pnand %p3037_p2, %p3031_p0 }
  0xf9   : > { %3041 = shalt.err (!%p3038_p4)
}
  0xfa   : > { %s3042_s5 = scalar_lea.vmem %s3691_s15, 512  ;;  %s3237_s27 = smov [#allocation14]  }
  0xfb   : > { %p3043_p1 = scmp.ne.s32.totalorder %s3691_s15, %s3042_s5  ;;  %s3047_s29 = sshll.u32 %s3237_s27, 4  ;;  %s3048_s29 = int_to_ptr.vmem [resolvable:$false] %s3047_s29 }
  0xfc   : > { %s3049_s18 = scalar_lea.vmem %s3048_s29, 1024  ;;  %p3050_p11 = scmp.lt.s32.totalorder %s3691_s15, %s3048_s29 }
  0xfd   : > { %p3045_p6 = pnand %p3043_p1, %p4279_p5  ;;  %p3051_p7 = scmp.lt.s32.totalorder %s3049_s18, %s3042_s5 }
  0xff   : > { %p3046_p10 = pneg %p3045_p6  ;;  %p3052_p8 = por %p3051_p7, %p3050_p11 }
 0x101   : > { %p3053_p9 = pnand %p3052_p8, %p3046_p10 }
 0x103   : > { %3056 = shalt.err (!%p3053_p9)
}
 0x104   : > { %s4287_s4 = scalar_lea.sflag [#allocation13], %s3409_s16  ;;  %s2377_s10 = sshll.u32 %s4284_s14, 1 }
 0x105   : > { %2669 = dma.hbm_to_vmem [thread:$0]  (!%p4280_p3), %s3696_s2, 512, %s3691_s15, %s4287_s4, %s4282_s6, %s4282_s6, %s4281_s1  }
 0x106   : > { %s2378_s25 = sshll.u32 %s4285_s26, 2  ;;  %s450_s12 = scalar_lea.vmem [#allocation15], %s3476_s11 }
 0x107   : > { %s459_s30 = sshll.u32 %s450_s12, 4  ;;  %s456_s23 = sadd.s32 %s2378_s25, %s2377_s10  ;;  %s3727_s30 = int_to_ptr.vmem [resolvable:$true] %s459_s30 }
 0x108   : > { %s2379_s17 = sshll.u32 %s456_s23, 7  ;;  %s4288_s27 = sld [smem:[#allocation44_spill]] }
 0x109   : > { %s447_s29 = scalar_lea.sflag [#allocation16], %s3473_s8 }
 0x10e   : > { %s4289_s18 = smov %s4288_s27  ;;  %s3732_s16 = scalar_lea.hbm %s4288_s27, %s2379_s17 }
 0x10f   : > { %s3057_s0 = scalar_lea.hbm %s3732_s16, 256  ;;  %s3062_s1 = scalar_lea.hbm %s4289_s18, 1024 }
 0x110   : > { %p3058_p0 = scmp.ne.s32.totalorder %s3732_s16, %s3057_s0  ;;  %p3063_p2 = scmp.lt.u32.totalorder %s3732_s16, %s4289_s18 }
 0x111   : > { %p3064_p4 = scmp.lt.u32.totalorder %s3062_s1, %s3057_s0  ;;  %p3066_p6 = scmp.lt.u32.totalorder %s3057_s0, %s3732_s16 }
 0x112   : > { %p3060_p12 = pnand %p3058_p0, %p4279_p5 }
 0x113   : > { %p3065_p1 = por %p3064_p4, %p3063_p2 }
 0x114   : > { %p3061_p13 = pneg %p3060_p12 }
 0x115   : > { %p3067_p10 = por %p3066_p6, %p3065_p1 }
 0x117   : > { %p3068_p11 = pnand %p3067_p10, %p3061_p13 }
 0x119   : > { %3071 = shalt.err (!%p3068_p11)
}
 0x11a   : > { %s3072_s26 = scalar_lea.vmem %s3727_s30, 256  ;;  %s3238_s15 = smov [#allocation15]  }
 0x11b   : > { %p3073_p7 = scmp.ne.s32.totalorder %s3727_s30, %s3072_s26  ;;  %s3077_s4 = sshll.u32 %s3238_s15, 4  ;;  %s3078_s4 = int_to_ptr.vmem [resolvable:$false] %s3077_s4 }
 0x11c   : > { %s3079_s10 = scalar_lea.vmem %s3078_s4, 512  ;;  %p3080_p0 = scmp.lt.s32.totalorder %s3727_s30, %s3078_s4 }
 0x11d   : > { %p3075_p8 = pnand %p3073_p7, %p4279_p5  ;;  %p3081_p12 = scmp.lt.s32.totalorder %s3079_s10, %s3072_s26 }
 0x11f   : > { %p3076_p9 = pneg %p3075_p8  ;;  %p3082_p2 = por %p3081_p12, %p3080_p0 }
 0x121   : > { %p3083_p4 = pnand %p3082_p2, %p3076_p9 }
 0x123   : > { %3086 = shalt.err (!%p3083_p4)
}
 0x124   : > { %s4290_s0 = smov 8   ;;  %s4291_s25 = smov 128  }
 0x125   : > { %2672 = dma.hbm_to_vmem [thread:$0]  (!%p4280_p3), %s3732_s16, 256, %s3727_s30, %s447_s29, %s4291_s25, %s4291_s25, %s4290_s0  }
 0x126   : > { %p4292_p5 = scmp.ne.s32.totalorder %s4271_s22, 0 }
 0x127   : > { %p4293_p13 = scmp.eq.s32.totalorder (!%p4292_p5), %s3561_s13, 0 }
 0x128   : > { %471 = sbr.rel (%p4292_p5) target bundleno = 4505 (0x1199), region = 52 }
 0x12f   : > { %3160 = dma.done.wait (%p4293_p13), [#allocation4], 256   ;;  %p4294_p1 = pmov %p4293_p13 }
 0x130   : > { %s477_s7 = sand.u32 1, %s3561_s13   ;;  %s479_s21 = sand.u32 1, %s3201_s9  }
 0x131   : > { %3162 = vsyncadd (%p4294_p1), [#allocation4], 4294967040  ;;  %s3769_s12 = sshll.u32 %s479_s21, 3  ;;  %s478_s8 = scalar_lea.sflag [#allocation7], %s477_s7 }
 0x132   : > { %s481_s23 = scalar_lea.vmem [#allocation6], %s3769_s12  ;;  %p4295_p3 = scmp.ne.s32.totalorder %s4266_s19, 0 }
 0x134   : > { %3164 = dma.done.wait (%p4295_p3), %s478_s8, 256  }
 0x135   : > { %3166 = vsyncadd (%p4295_p3), %s478_s8, 4294967040  ;;  %s3777_s22 = sand.u32 1, %s3189_s28   ;;  %s490_s13 = scalar_lea.vmem [#allocation8], %s3769_s12 }
 0x136   : > { %s3780_s30 = sshll.u32 %s3777_s22, 4  ;;  %s496_s17 = scalar_lea.sflag [#allocation10], %s477_s7 }
 0x137   : > { %s499_s20 = scalar_lea.vmem [#allocation9], %s3780_s30  ;;  %p4296_p6 = scmp.ne.s32.totalorder %s4268_s3, 0 }
 0x139   : > { %3168 = dma.done.wait (%p4296_p6), %s496_s17, 512  }
 0x13a   : > { %3170 = vsyncadd (%p4296_p6), %s496_s17, 4294966784  ;;  %s3789_s19 = scalar_lea.vmem [#allocation11], %s3780_s30  ;;  %s514_s5 = scalar_lea.sflag [#allocation13], %s477_s7 }
 0x13b   : > { %s517_s27 = scalar_lea.vmem [#allocation12], %s3780_s30 }
 0x13c   : > { %3172 = dma.done.wait (%p4296_p6), %s514_s5, 768  }
 0x13d   : > { %3174 = vsyncadd (%p4296_p6), %s514_s5, 4294966528  ;;  %s2387_s16 = sshll.u32 %s3777_s22, 5  ;;  %s532_s2 = scalar_lea.sflag [#allocation16], %s3777_s22 }
 0x13e   : > { %s3797_s29 = scalar_lea.vmem [#allocation14], %s2387_s16  ;;  %s3801_s11 = scalar_lea.vmem [#allocation15], %s3780_s30 }
 0x13f   : > { %3176 = dma.done.wait (%p4296_p6), %s532_s2, 256  }
 0x140   : > { %3178 = vsyncadd (%p4296_p6), %s532_s2, 4294967040  ;;  %s3808_s1 = scalar_lea.vmem [#allocation17], %s3780_s30  ;;  %s4297_s6 = sld [smem:[#allocation27_spill]] }
 0x146   : > { %p2390_p10 = scmp.ne.s32.totalorder %s4297_s6, 0 }
 0x147   : > { %v603_v0 = vld [vmem:[#allocation3] sm:$0xff] (!%p2390_p10)  ;;  %vm605_vm0 = vcmask (!%p2390_p10), 261120   ;;  %v604_v1 = vld [vmem:[#allocation3 + $0x8] sm:$0xff] (!%p2390_p10) }
 0x148   : > { %602 = sbr.rel (%p2390_p10) target bundleno = 335 (0x14f), region = 88  ;;  %606 = vst.msk [vmem:[#allocation2] sm:$0xff] (!%p2390_p10), %vm605_vm0, %v603_v0  ;;  %607 = vst.msk [vmem:[#allocation2 + $0x8] sm:$0xff] (!%p2390_p10), %vm605_vm0, %v604_v1 }
 0x14f PF: > { %v2792_v2 = vld [vmem:[%s499_s20] sm:$0xff]   ;;  %v3239_v3 = vmov 0.0   ;;  %v2793_v4 = vld [vmem:[%s499_s20 + $0x8] sm:$0xff]   ;;  %vm3240_vm1 = vmmov 0   ;;  %vm633_vm2 = vcmask 261120   ;;  %v617_v8 = vlaneseq  ;;  %s3241_s3 = smov 96  }
 0x150   : > { %2479 = vmatprep.subr.bf16.mxu1 %v3239_v3  ;;  %2493 = vmatprep.subr.bf16.mxu0 %v3239_v3  ;;  %v3815_v5 = vld [vmem:[#allocation2] sm:$0xff]  ;;  %v3817_v6 = vld [vmem:[#allocation2 + $0x8] sm:$0xff]  ;;  %vm685_vm3 = vcmask 64512   ;;  %v3242_v25 = vmov 0   ;;  %v679_v39 = vld [vmem:[%s490_s13] sm:$0xff]  ;;  %s3243_s14 = smov 64  }
 0x151   : > { %2480 = vmatpush3.bf16.msra.mxu1 %v2792_v2  ;;  %2483 = vmatprep.mubr.msk.bf16.mxu1 %vm3240_vm1, %v3239_v3  ;;  %v612_v7 = vpack.c.bf16 %v3817_v6, %v3815_v5  ;;  %v3828_v9 = vshrl.u32 %v617_v8, 7  ;;  %v3832_v11 = vld [vmem:[%s3801_s11] sm:$0xff]  ;;  %s3244_s26 = smov 88   ;;  %vm817_vm4 = vcmask 1043456   ;;  %s3245_s15 = smov 120   ;;  %vm1935_vm9 = vcmask 523264  }
 0x152   : > { %2481 = vmatprep.subr.bf16.mxu1 %v3239_v3  ;;  %2495 = vmatprep.mubr.msk.bf16.mxu0 %vm3240_vm1, %v3239_v3  ;;  %v3857_v26 = vld [vmem:[%s481_s23] sm:$0xff]  ;;  %s3246_s4 = smov 56   ;;  %s3247_s10 = smov 80  }
 0x153   : > { %v619_v10 = vsub.s32 0, %v3828_v9  ;;  %2790 = vset.pattern.permute.xlu1 %v3242_v25  ;;  %2791 = vset.pattern.permute.xlu0 %v3242_v25  ;;  %s3248_s0 = smov 112   ;;  %s3249_s25 = smov 48  }
 0x154   : > { %s3250_s7 = smov 72   ;;  %s3251_s21 = smov 104  }
 0x155   : > { %2482 = vmatpush3.bf16.msra.mxu1 %v2793_v4  ;;  %v620_v12 = vrot.slane %v3832_v11, %v619_v10  ;;  %s3252_s12 = smov 40   ;;  %s4298_s8 = sld [smem:[#allocation27_spill]] }
 0x156   : > { %2487 = vmatprep.subr.bf16.mxu1 %v3239_v3  ;;  %s4299_s23 = sld [smem:[#allocation28_spill]]  ;;  %s4300_s16 = sld [smem:[#allocation45_spill]] }
 0x157   : > { %s2093_s2 = scalar_lea.sflag [#allocation5], %s3777_s22  ;;  %p4301_p7 = scmp.ne.s32.totalorder %s4270_s24, 0 }
 0x158   : > { %2484 = vmatmul.mubr.msk.bf16.vlgmr.msra.gmra.mrb[0].mxu1 %vm633_vm2, %v612_v7  ;;  %s3253_s6 = smov [#allocation17]  }
 0x159   : > { %2489 = vmatprep.mubr.msk.bf16.mxu1 %vm3240_vm1, %v3239_v3 }
 0x15b   : > { %s2423_s30 = sshll.u32 %s4298_s8, 1 }
 0x15c   : > { %s2424_s13 = sshll.u32 %s4299_s23, 2 }
 0x15d   : > { %s2105_s17 = sadd.s32 %s2424_s13, %s2423_s30 }
 0x15e   : > { %s2425_s20 = sshll.u32 %s2105_s17, 7 }
 0x22b   : > { %v671_v13 = vpop.f32.mrb[0].mxu1 }
 0x22c   : > { %v672_v14 = vadd.f32 %v671_v13, %v620_v12  ;;  %v2485_v15 = vpop.f32.mrb[1].mxu1 }
 0x22d   : > { %v674_v16 = vpop.f32.mrb[2].mxu1 }
 0x22e   : > { %v3837_v17 = vpack.c.bf16 %v672_v14, %v672_v14  ;;  %v675_v18 = vadd.f32 %v674_v16, %v620_v12  ;;  %v2486_v19 = vpop.f32.mrb[3].mxu1 }
 0x230   : > { %683 = vrot.lane.b32.xlu0 %v3837_v17, %s3241_s3  ;;  %v3840_v20 = vpack.c.bf16 %v675_v18, %v675_v18 }
 0x234   : > { %733 = vrot.lane.b32.xlu0 %v3840_v20, %s3241_s3  ;;  %s3091_s3 = sshll.u32 %s3253_s6, 4  ;;  %s3092_s3 = int_to_ptr.vmem [resolvable:$false] %s3091_s3 }
 0x2a2   : > { %v684_v21 = vpop.permute.xlu0 %683 }
 0x2a3   : > { %v690_v22 = vsel %vm685_vm3, %v684_v21, 0 }
 0x2a4   : > { %2488 = vmatpush3.bf16.xpose.msra.mxu1 %v690_v22 }
 0x2a5   : > { %2499 = vmatprep.subr.bf16.mxu1 %v3239_v3 }
 0x2a6   : > { %v734_v23 = vpop.permute.xlu0 %733 }
 0x2a7   : > { %v739_v24 = vsel %vm685_vm3, %v734_v23, 0 }
 0x2a8   : > { %2494 = vmatpush3.bf16.xpose.msra.mxu0 %v739_v24 }
 0x2a9   : > { %2505 = vmatprep.subr.bf16.mxu0 %v3239_v3 }
 0x2ab   : > { %2490 = vmatmul.mubr.msk.bf16.vlgmr.msra.gmra.mrb[4].mxu1 %vm685_vm3, %v3837_v17 }
 0x2ac   : > { %2501 = vmatprep.mubr.msk.bf16.mxu1 %vm3240_vm1, %v3239_v3 }
 0x2af   : > { %2496 = vmatmul.mubr.msk.bf16.vlgmr.msra.gmra.mrb[0].mxu0 %vm685_vm3, %v3840_v20 }
 0x2b0   : > { %2507 = vmatprep.mubr.msk.bf16.mxu0 %vm3240_vm1, %v3239_v3 }
 0x37e   : > { %v726_v27 = vpop.f32.mrb[4].mxu1 }
 0x37f   : > { %v727_v28 = vadd.f32 %v726_v27, %v3857_v26  ;;  %v2491_v29 = vpop.f32.mrb[5].mxu1 }
 0x380   : > { %v729_v30 = vpop.f32.mrb[6].mxu1 }
 0x381   : > { %v2492_v31 = vpop.f32.mrb[7].mxu1  ;;  %v781_v32 = vsel %vm685_vm3, %v727_v28, -inf }
 0x382   : > { %v775_v33 = vpop.f32.mrb[0].mxu0  ;;  %782 = vmax.xlane.f32.xlu1 %v781_v32 }
 0x383   : > { %v776_v34 = vadd.f32 %v775_v33, %v3857_v26  ;;  %v2497_v35 = vpop.f32.mrb[1].mxu0 }
 0x384   : > { %v778_v36 = vpop.f32.mrb[2].mxu0 }
 0x385   : > { %v2498_v37 = vpop.f32.mrb[3].mxu0  ;;  %v784_v38 = vsel %vm685_vm3, %v776_v34, -inf }
 0x386   : > { %785 = vmax.xlane.f32.xlu1 %v784_v38 }
 0x397   : > { %805 = vperm.xlu1 %2790, %v679_v39  }
 0x39b   : > { %812 = vrot.lane.b32.xlu1 %v3837_v17, %s3243_s14 }
 0x39f   : > { %861 = vrot.lane.b32.xlu1 %v3840_v20, %s3243_s14  ;;  %s3093_s14 = scalar_lea.vmem %s3092_s3, 512 }
 0x3a3   : > { %913 = vrot.lane.b32.xlu1 %v3837_v17, %s3244_s26 }
 0x40f   : > { %v783_v40 = vpop.xlane.xlu1 %782 }
 0x410   : > { %v787_v41 = vsub.f32 %v727_v28, %v783_v40 }
 0x412   : > { %v789_v42 = vmul.f32 1.442695, %v787_v41 }
 0x413   : > { %v786_v43 = vpop.xlane.xlu1 %785 }
 0x414   : > { %2800 = vpow2.f32 %v789_v42  ;;  %v788_v44 = vsub.f32 %v776_v34, %v786_v43 }
 0x416   : > { %v791_v45 = vmul.f32 1.442695, %v788_v44 }
 0x417   : > { %v3868_v46 = vpop.permute.xlu1 %805 }
 0x418   : > { %2802 = vpow2.f32 %v791_v45 }
 0x41b   : > { %v813_v47 = vpop.permute.xlu1 %812 }
 0x41c   : > { %v819_v48 = vsel %vm817_vm4, %v813_v47, 0 }
 0x41d   : > { %2500 = vmatpush3.bf16.msra.mxu1 %v819_v48 }
 0x41e   : > { %v2801_v49 = vpop.eup %2800  ;;  %2511 = vmatprep.subr.bf16.mxu1 %v3239_v3 }
 0x41f   : > { %v862_v50 = vpop.permute.xlu1 %861  ;;  %v793_v51 = vsel %vm685_vm3, %v2801_v49, 0.0 }
 0x420   : > { %v867_v52 = vsel %vm817_vm4, %v862_v50, 0  ;;  %794 = vadd.xlane.f32.xlu0 %v793_v51 }
 0x421   : > { %2506 = vmatpush3.bf16.msra.mxu0 %v867_v52 }
 0x422   : > { %v2803_v53 = vpop.eup %2802  ;;  %2517 = vmatprep.subr.bf16.mxu0 %v3239_v3 }
 0x423   : > { %v796_v54 = vsel %vm685_vm3, %v2803_v53, 0.0  ;;  %v914_v55 = vpop.permute.xlu1 %913 }
 0x424   : > { %797 = vadd.xlane.f32.xlu1 %v796_v54  ;;  %v919_v0 = vsel %vm685_vm3, %v914_v55, 0 }
 0x435   : > { %911 = vrot.lane.b32.xlu1 %v3837_v17, %s3245_s15 }
 0x436   : > { %963 = vrot.lane.b32.xlu0 %v3840_v20, %s3244_s26 }
 0x439   : > { %961 = vrot.lane.b32.xlu1 %v3840_v20, %s3245_s15 }
 0x4ad   : > { %v795_v56 = vpop.xlane.xlu0 %794 }
 0x4ae   : > { %2804 = vrcp.f32 %v795_v56  ;;  %v1134_v56 = vld [vmem:[%s3789_s19 + $0x4] sm:$0xf] }
 0x4b1   : > { %v798_v57 = vpop.xlane.xlu1 %797  ;;  %v964_v2 = vpop.permute.xlu0 %963 }
 0x4b2   : > { %2806 = vrcp.f32 %v798_v57  ;;  %v969_v7 = vsel %vm685_vm3, %v964_v2, 0 }
 0x4b5   : > { %v912_v8 = vpop.permute.xlu1 %911 }
 0x4b8   : > { %v2805_v58 = vpop.eup %2804 }
 0x4b9   : > { %v801_v59 = vmul.f32 %v2805_v58, %v2801_v49  ;;  %v962_v12 = vpop.permute.xlu1 %961 }
 0x4bb   : > { %v808_v60 = vmul.f32 %v3868_v46, %v801_v59 }
 0x4bc   : > { %v2807_v61 = vpop.eup %2806 }
 0x4bd   : > { %v802_v62 = vmul.f32 %v2807_v61, %v2803_v53  ;;  %v810_v63 = vpack.c.bf16 %v808_v60, %v808_v60  ;;  %v1139_v61 = vsel %vm817_vm4, %v1134_v56, 0 }
 0x4bf   : > { %2502 = vmatmul.mubr.msk.bf16.vlgmr.msra.gmra.mrb[8].mxu1 %vm685_vm3, %v810_v63  ;;  %v809_v1 = vmul.f32 %v3868_v46, %v802_v62  ;;  %v910_v62 = vld [vmem:[%s3789_s19] sm:$0xf] }
 0x4c0   : > { %2512 = vmatpush3.bf16.xpose.msra.mxu1 %v919_v0  ;;  %2513 = vmatprep.mubr.msk.bf16.mxu1 %vm3240_vm1, %v3239_v3 }
 0x4c1   : > { %v811_v4 = vpack.c.bf16 %v809_v1, %v809_v1  ;;  %2523 = vmatprep.subr.bf16.mxu1 %v3239_v3  ;;  %v1186_v1 = vsel %vm817_vm4, %v910_v62, 0 }
 0x4c3   : > { %2508 = vmatmul.mubr.msk.bf16.vlgmr.msra.gmra.mrb[4].mxu0 %vm685_vm3, %v811_v4 }
 0x4c4   : > { %2518 = vmatpush3.bf16.xpose.msra.mxu0 %v969_v7  ;;  %2519 = vmatprep.mubr.msk.bf16.mxu0 %vm3240_vm1, %v3239_v3 }
 0x4c5   : > { %2529 = vmatprep.subr.bf16.mxu0 %v3239_v3 }
 0x4c7   : > { %2514 = vmatmul.mubr.msk.bf16.vlgmr.msra.gmra.mrb[12].mxu1 %vm685_vm3, %v912_v8 }
 0x4c8   : > { %2525 = vmatprep.mubr.msk.bf16.mxu1 %vm3240_vm1, %v3239_v3 }
 0x4cb   : > { %2520 = vmatmul.mubr.msk.bf16.vlgmr.msra.gmra.mrb[8].mxu0 %vm685_vm3, %v962_v12 }
 0x4cc   : > { %2531 = vmatprep.mubr.msk.bf16.mxu0 %vm3240_vm1, %v3239_v3 }
 0x592   : > { %v3897_v13 = vpop.f32.mrb[8].mxu1 }
 0x593   : > { %v2503_v14 = vpop.f32.mrb[9].mxu1 }
 0x594   : > { %v858_v15 = vpop.f32.mrb[10].mxu1 }
 0x595   : > { %v2504_v16 = vpop.f32.mrb[11].mxu1 }
 0x596   : > { %v3899_v18 = vpop.f32.mrb[4].mxu0 }
 0x597   : > { %v909_v19 = vpack.c.bf16 %v3899_v18, %v3897_v13  ;;  %v2509_v21 = vpop.f32.mrb[5].mxu0 }
 0x598   : > { %v906_v22 = vpop.f32.mrb[6].mxu0 }
 0x599   : > { %v2510_v23 = vpop.f32.mrb[7].mxu0 }
 0x59a   : > { %v955_v24 = vpop.f32.mrb[12].mxu1 }
 0x59b   : > { %v956_v25 = vadd.f32 %v955_v24, %v3857_v26  ;;  %v2515_v27 = vpop.f32.mrb[13].mxu1 }
 0x59c   : > { %v958_v28 = vpop.f32.mrb[14].mxu1 }
 0x59d   : > { %v2516_v29 = vpop.f32.mrb[15].mxu1  ;;  %v1011_v30 = vsel %vm685_vm3, %v956_v25, -inf }
 0x59e   : > { %v1005_v31 = vpop.f32.mrb[8].mxu0  ;;  %1012 = vmax.xlane.f32.xlu1 %v1011_v30 }
 0x59f   : > { %v1006_v32 = vadd.f32 %v1005_v31, %v3857_v26  ;;  %v2521_v33 = vpop.f32.mrb[9].mxu0 }
 0x5a0   : > { %v1008_v34 = vpop.f32.mrb[10].mxu0 }
 0x5a1   : > { %v2522_v35 = vpop.f32.mrb[11].mxu0  ;;  %v1014_v36 = vsel %vm685_vm3, %v1006_v32, -inf }
 0x5a2   : > { %1015 = vmax.xlane.f32.xlu0 %v1014_v36 }
 0x5b8   : > { %1037 = vrot.lane.b32.xlu0 %v3837_v17, %s3246_s4 }
 0x5bc   : > { %1281 = vrot.lane.b32.xlu0 %v3840_v20, %s3247_s10 }
 0x5c0   : > { %1279 = vrot.lane.b32.xlu0 %v3840_v20, %s3248_s0 }
 0x62b   : > { %v1013_v37 = vpop.xlane.xlu1 %1012 }
 0x62c   : > { %v1017_v38 = vsub.f32 %v956_v25, %v1013_v37 }
 0x62e   : > { %v1019_v39 = vmul.f32 1.442695, %v1017_v38 }
 0x62f   : > { %v1016_v40 = vpop.xlane.xlu0 %1015 }
 0x630   : > { %2808 = vpow2.f32 %v1019_v39  ;;  %v1018_v41 = vsub.f32 %v1006_v32, %v1016_v40 }
 0x632   : > { %v1021_v42 = vmul.f32 1.442695, %v1018_v41 }
 0x633   : > { %v1038_v43 = vpop.permute.xlu0 %1037 }
 0x634   : > { %2810 = vpow2.f32 %v1021_v42  ;;  %v1043_v44 = vsel %vm817_vm4, %v1038_v43, 0 }
 0x635   : > { %2524 = vmatpush3.bf16.msra.mxu1 %v1043_v44 }
 0x636   : > { %2535 = vmatprep.subr.bf16.mxu1 %v3239_v3 }
 0x637   : > { %v1282_v2 = vpop.permute.xlu0 %1281 }
 0x638   : > { %v1287_v4 = vsel %vm685_vm3, %v1282_v2, 0 }
 0x63a   : > { %v2809_v45 = vpop.eup %2808 }
 0x63b   : > { %v1023_v47 = vsel %vm685_vm3, %v2809_v45, 0.0  ;;  %v1280_v7 = vpop.permute.xlu0 %1279 }
 0x63c   : > { %1024 = vadd.xlane.f32.xlu1 %v1023_v47 }
 0x63e   : > { %v2811_v48 = vpop.eup %2810 }
 0x63f   : > { %v1026_v49 = vsel %vm685_vm3, %v2811_v48, 0.0 }
 0x640   : > { %1027 = vadd.xlane.f32.xlu1 %v1026_v49 }
 0x651   : > { %1085 = vrot.lane.b32.xlu1 %v3840_v20, %s3246_s4 }
 0x655   : > { %1231 = vrot.lane.b32.xlu1 %v3837_v17, %s3247_s10 }
 0x659   : > { %1229 = vrot.lane.b32.xlu1 %v3837_v17, %s3248_s0 }
 0x6c9   : > { %v1025_v50 = vpop.xlane.xlu1 %1024 }
 0x6ca   : > { %2812 = vrcp.f32 %v1025_v50 }
 0x6cd   : > { %v1028_v51 = vpop.xlane.xlu1 %1027 }
 0x6ce   : > { %2814 = vrcp.f32 %v1028_v51 }
 0x6d1   : > { %v1086_v52 = vpop.permute.xlu1 %1085 }
 0x6d2   : > { %v1091_v53 = vsel %vm817_vm4, %v1086_v52, 0 }
 0x6d3   : > { %2530 = vmatpush3.bf16.msra.mxu0 %v1091_v53 }
 0x6d4   : > { %v2813_v54 = vpop.eup %2812  ;;  %2541 = vmatprep.subr.bf16.mxu0 %v3239_v3 }
 0x6d5   : > { %v1031_v55 = vmul.f32 %v2813_v54, %v2809_v45  ;;  %v1232_v15 = vpop.permute.xlu1 %1231 }
 0x6d6   : > { %v1237_v22 = vsel %vm685_vm3, %v1232_v15, 0 }
 0x6d7   : > { %v1033_v57 = vmul.f32 %v1031_v55, %v3868_v46 }
 0x6d8   : > { %v2815_v58 = vpop.eup %2814 }
 0x6d9   : > { %v1032_v59 = vmul.f32 %v2815_v58, %v2811_v48  ;;  %v1035_v60 = vpack.c.bf16 %v1033_v57, %v1033_v57  ;;  %v1230_v27 = vpop.permute.xlu1 %1229 }
 0x6db   : > { %2526 = vmatmul.mubr.msk.bf16.vlgmr.msra.gmra.mrb[16].mxu1 %vm685_vm3, %v1035_v60  ;;  %v1034_v63 = vmul.f32 %v1032_v59, %v3868_v46 }
 0x6dc   : > { %2536 = vmatpush3.bf16.msra.mxu1 %v1139_v61  ;;  %2537 = vmatprep.mubr.msk.bf16.mxu1 %vm3240_vm1, %v3239_v3 }
 0x6dd   : > { %v1036_v0 = vpack.c.bf16 %v1034_v63, %v1034_v63  ;;  %2547 = vmatprep.subr.bf16.mxu1 %v3239_v3 }
 0x6df   : > { %2532 = vmatmul.mubr.msk.bf16.vlgmr.msra.gmra.mrb[12].mxu0 %vm685_vm3, %v1036_v0 }
 0x6e0   : > { %2542 = vmatpush3.bf16.msra.mxu0 %v1186_v1  ;;  %2543 = vmatprep.mubr.msk.bf16.mxu0 %vm3240_vm1, %v3239_v3 }
 0x6e1   : > { %2553 = vmatprep.subr.bf16.mxu0 %v3239_v3 }
 0x6e7   : > { %2544 = vmatmul.mubr.msk.bf16.vlgmr.msra.gmra.mrb[16].mxu0 %vm685_vm3, %v909_v19 }
 0x6e8   : > { %2555 = vmatprep.mubr.msk.bf16.mxu0 %vm3240_vm1, %v3239_v3 }
 0x6e9   : > { %2554 = vmatpush3.bf16.xpose.msra.mxu0 %v1287_v4 }
 0x6ea   : > { %2565 = vmatprep.subr.bf16.mxu0 %v3239_v3 }
 0x6f0   : > { %2556 = vmatmul.mubr.msk.bf16.vlgmr.msra.gmra.mrb[20].mxu0 %vm685_vm3, %v1280_v7 }
 0x6f1   : > { %2567 = vmatprep.mubr.msk.bf16.mxu0 %vm3240_vm1, %v3239_v3 }
 0x7ae   : > { %v1079_v8 = vpop.f32.mrb[16].mxu1 }
 0x7af   : > { %v2527_v12 = vpop.f32.mrb[17].mxu1 }
 0x7b0   : > { %v1082_v14 = vpop.f32.mrb[18].mxu1 }
 0x7b1   : > { %v2528_v13 = vpop.f32.mrb[19].mxu1 }
 0x7b2   : > { %v1127_v16 = vpop.f32.mrb[12].mxu0 }
 0x7b3   : > { %v1133_v18 = vpack.c.bf16 %v1127_v16, %v1079_v8  ;;  %v2533_v19 = vpop.f32.mrb[13].mxu0  ;;  %v1452_v16 = vld [vmem:[%s3789_s19 + $0x8] sm:$0xf] }
 0x7b4   : > { %v1130_v21 = vpop.f32.mrb[14].mxu0 }
 0x7b5   : > { %v2534_v23 = vpop.f32.mrb[15].mxu0  ;;  %2538 = vmatmul.mubr.msk.bf16.vlgmr.msra.gmra.mrb[20].mxu1 %vm685_vm3, %v1133_v18  ;;  %v1457_v21 = vsel %vm817_vm4, %v1452_v16, 0 }
 0x7b6   : > { %2548 = vmatpush3.bf16.xpose.msra.mxu1 %v1237_v22  ;;  %2549 = vmatprep.mubr.msk.bf16.mxu1 %vm3240_vm1, %v3239_v3 }
 0x7b7   : > { %2559 = vmatprep.subr.bf16.mxu1 %v3239_v3 }
 0x7ba   : > { %v1222_v24 = vpop.f32.mrb[16].mxu0 }
 0x7bb   : > { %v2545_v25 = vpop.f32.mrb[17].mxu0 }
 0x7bc   : > { %v1225_v28 = vpop.f32.mrb[18].mxu0 }
 0x7bd   : > { %v2546_v29 = vpop.f32.mrb[19].mxu0  ;;  %2550 = vmatmul.mubr.msk.bf16.vlgmr.msra.gmra.mrb[24].mxu1 %vm685_vm3, %v1230_v27 }
 0x7be   : > { %2561 = vmatprep.mubr.msk.bf16.mxu1 %vm3240_vm1, %v3239_v3 }
 0x7c3   : > { %v1323_v30 = vpop.f32.mrb[20].mxu0 }
 0x7c4   : > { %v1324_v31 = vadd.f32 %v1323_v30, %v3857_v26  ;;  %v2557_v32 = vpop.f32.mrb[21].mxu0 }
 0x7c5   : > { %v1326_v33 = vpop.f32.mrb[22].mxu0 }
 0x7c6   : > { %v2558_v34 = vpop.f32.mrb[23].mxu0  ;;  %v1332_v35 = vsel %vm685_vm3, %v1324_v31, -inf }
 0x7c7   : > { %1333 = vmax.xlane.f32.xlu0 %v1332_v35 }
 0x854   : > { %v1334_v36 = vpop.xlane.xlu0 %1333 }
 0x855   : > { %v1336_v37 = vsub.f32 %v1324_v31, %v1334_v36 }
 0x857   : > { %v1339_v38 = vmul.f32 1.442695, %v1336_v37 }
 0x859   : > { %2816 = vpow2.f32 %v1339_v38 }
 0x863   : > { %v2817_v52 = vpop.eup %2816 }
 0x864   : > { %v1344_v53 = vsel %vm685_vm3, %v2817_v52, 0.0 }
 0x888   : > { %v1175_v39 = vpop.f32.mrb[20].mxu1 }
 0x889   : > { %v3954_v40 = vadd.f32 %v1222_v24, %v1175_v39  ;;  %v2539_v41 = vpop.f32.mrb[21].mxu1 }
 0x88a   : > { %v1178_v42 = vpop.f32.mrb[22].mxu1 }
 0x88b   : > { %v3956_v43 = vadd.f32 %v1225_v28, %v1178_v42  ;;  %v2540_v44 = vpop.f32.mrb[23].mxu1 }
 0x890   : > { %v1273_v45 = vpop.f32.mrb[24].mxu1 }
 0x891   : > { %v1274_v47 = vadd.f32 %v1273_v45, %v3857_v26  ;;  %v2551_v48 = vpop.f32.mrb[25].mxu1 }
 0x892   : > { %v1276_v49 = vpop.f32.mrb[26].mxu1 }
 0x893   : > { %v2552_v50 = vpop.f32.mrb[27].mxu1  ;;  %v1329_v51 = vsel %vm685_vm3, %v1274_v47, -inf }
 0x894   : > { %1330 = vmax.xlane.f32.xlu1 %v1329_v51 }
 0x898   : > { %1345 = vadd.xlane.f32.xlu1 %v1344_v53 }
 0x8a9   : > { %1403 = vrot.lane.b32.xlu1 %v3840_v20, %s3249_s25 }
 0x8ad   : > { %1504 = vrot.lane.b32.xlu1 %v3837_v17, %s3250_s7 }
 0x8b1   : > { %1502 = vrot.lane.b32.xlu1 %v3837_v17, %s3251_s21 }
 0x921   : > { %v1331_v54 = vpop.xlane.xlu1 %1330 }
 0x922   : > { %v1335_v55 = vsub.f32 %v1274_v47, %v1331_v54 }
 0x924   : > { %v1337_v56 = vmul.f32 1.442695, %v1335_v55 }
 0x925   : > { %v1346_v57 = vpop.xlane.xlu1 %1345 }
 0x926   : > { %2818 = vpow2.f32 %v1337_v56 }
 0x927   : > { %2820 = vrcp.f32 %v1346_v57 }
 0x929   : > { %v1404_v58 = vpop.permute.xlu1 %1403 }
 0x92a   : > { %v1409_v59 = vsel %vm817_vm4, %v1404_v58, 0 }
 0x92b   : > { %2566 = vmatpush3.bf16.msra.mxu0 %v1409_v59 }
 0x92c   : > { %2577 = vmatprep.subr.bf16.mxu0 %v3239_v3 }
 0x92d   : > { %v1505_v1 = vpop.permute.xlu1 %1504 }
 0x92e   : > { %v1510_v4 = vsel %vm685_vm3, %v1505_v1, 0 }
 0x930   : > { %v2819_v60 = vpop.eup %2818 }
 0x931   : > { %v2821_v61 = vpop.eup %2820  ;;  %v1341_v62 = vsel %vm685_vm3, %v2819_v60, 0.0  ;;  %v1503_v7 = vpop.permute.xlu1 %1502 }
 0x932   : > { %v1350_v63 = vmul.f32 %v2821_v61, %v2817_v52  ;;  %1342 = vadd.xlane.f32.xlu0 %v1341_v62 }
 0x934   : > { %v1352_v0 = vmul.f32 %v1350_v63, %v3868_v46 }
 0x936   : > { %v1354_v2 = vpack.c.bf16 %v1352_v0, %v1352_v0 }
 0x938   : > { %2568 = vmatmul.mubr.msk.bf16.vlgmr.msra.gmra.mrb[24].mxu0 %vm685_vm3, %v1354_v2 }
 0x939   : > { %2578 = vmatpush3.bf16.xpose.msra.mxu0 %v1510_v4  ;;  %2579 = vmatprep.mubr.msk.bf16.mxu0 %vm3240_vm1, %v3239_v3 }
 0x93a   : > { %2589 = vmatprep.subr.bf16.mxu0 %v3239_v3 }
 0x940   : > { %2580 = vmatmul.mubr.msk.bf16.vlgmr.msra.gmra.mrb[28].mxu0 %vm685_vm3, %v1503_v7 }
 0x941   : > { %2591 = vmatprep.mubr.msk.bf16.mxu0 %vm3240_vm1, %v3239_v3 }
 0x948   : > { %1355 = vrot.lane.b32.xlu0 %v3837_v17, %s3249_s25 }
 0x94c   : > { %1554 = vrot.lane.b32.xlu0 %v3840_v20, %s3250_s7 }
 0x950   : > { %1552 = vrot.lane.b32.xlu0 %v3840_v20, %s3251_s21 }
 0x9bf   : > { %v1343_v8 = vpop.xlane.xlu0 %1342 }
 0x9c0   : > { %2822 = vrcp.f32 %v1343_v8  ;;  %v1725_v8 = vld [vmem:[%s3789_s19 + $0xc] sm:$0xf]  ;;  %s2108_s19 = sshll.u32 %s3808_s1, 4  ;;  %s4117_s19 = int_to_ptr.vmem [resolvable:$true] %s2108_s19 }
 0x9c1   : > { %p3094_p0 = scmp.lt.s32.totalorder %s4117_s19, %s3092_s3 }
 0x9c3   : > { %v1356_v12 = vpop.permute.xlu0 %1355 }
 0x9c4   : > { %v1361_v14 = vsel %vm817_vm4, %v1356_v12, 0  ;;  %v1730_v12 = vsel %vm817_vm4, %v1725_v8, 0 }
 0x9c5   : > { %2560 = vmatpush3.bf16.msra.mxu1 %v1361_v14 }
 0x9c6   : > { %2571 = vmatprep.subr.bf16.mxu1 %v3239_v3 }
 0x9c7   : > { %v1555_v33 = vpop.permute.xlu0 %1554 }
 0x9c8   : > { %v1560_v38 = vsel %vm685_vm3, %v1555_v33, 0 }
 0x9ca   : > { %v2823_v13 = vpop.eup %2822 }
 0x9cb   : > { %v1349_v15 = vmul.f32 %v2823_v13, %v2819_v60  ;;  %v1553_v41 = vpop.permute.xlu0 %1552 }
 0x9cd   : > { %v1351_v18 = vmul.f32 %v1349_v15, %v3868_v46 }
 0x9cf   : > { %v1353_v19 = vpack.c.bf16 %v1351_v18, %v1351_v18 }
 0x9d1   : > { %2562 = vmatmul.mubr.msk.bf16.vlgmr.msra.gmra.mrb[28].mxu1 %vm685_vm3, %v1353_v19 }
 0x9d2   : > { %2572 = vmatpush3.bf16.msra.mxu1 %v1457_v21  ;;  %2573 = vmatprep.mubr.msk.bf16.mxu1 %vm3240_vm1, %v3239_v3 }
 0x9d3   : > { %2583 = vmatprep.subr.bf16.mxu1 %v3239_v3 }
 0xa0b   : > { %v1445_v22 = vpop.f32.mrb[24].mxu0 }
 0xa0c   : > { %v2569_v23 = vpop.f32.mrb[25].mxu0 }
 0xa0d   : > { %v1448_v24 = vpop.f32.mrb[26].mxu0 }
 0xa0e   : > { %v2570_v25 = vpop.f32.mrb[27].mxu0 }
 0xa13   : > { %v1546_v27 = vpop.f32.mrb[28].mxu0 }
 0xa14   : > { %v1547_v28 = vadd.f32 %v1546_v27, %v3857_v26  ;;  %v2581_v29 = vpop.f32.mrb[29].mxu0 }
 0xa15   : > { %v1549_v30 = vpop.f32.mrb[30].mxu0 }
 0xa16   : > { %v2582_v31 = vpop.f32.mrb[31].mxu0  ;;  %v1602_v32 = vsel %vm685_vm3, %v1547_v28, -inf }
 0xa17   : > { %1603 = vmax.xlane.f32.xlu1 %v1602_v32 }
 0xaa4   : > { %v1397_v34 = vpop.f32.mrb[28].mxu1  ;;  %v1604_v42 = vpop.xlane.xlu1 %1603 }
 0xaa5   : > { %v1451_v35 = vpack.c.bf16 %v1445_v22, %v1397_v34  ;;  %v2563_v36 = vpop.f32.mrb[29].mxu1  ;;  %v1608_v44 = vsub.f32 %v1547_v28, %v1604_v42 }
 0xaa6   : > { %v1400_v37 = vpop.f32.mrb[30].mxu1 }
 0xaa7   : > { %v2564_v39 = vpop.f32.mrb[31].mxu1  ;;  %2574 = vmatmul.mubr.msk.bf16.vlgmr.msra.gmra.mrb[32].mxu1 %vm685_vm3, %v1451_v35  ;;  %v1610_v45 = vmul.f32 1.442695, %v1608_v44 }
 0xaa8   : > { %2584 = vmatpush3.bf16.xpose.msra.mxu1 %v1560_v38  ;;  %2585 = vmatprep.mubr.msk.bf16.mxu1 %vm3240_vm1, %v3239_v3 }
 0xaa9   : > { %2595 = vmatprep.subr.bf16.mxu1 %v3239_v3  ;;  %2824 = vpow2.f32 %v1610_v45 }
 0xaaf   : > { %2586 = vmatmul.mubr.msk.bf16.vlgmr.msra.gmra.mrb[36].mxu1 %vm685_vm3, %v1553_v41 }
 0xab0   : > { %2597 = vmatprep.mubr.msk.bf16.mxu1 %vm3240_vm1, %v3239_v3 }
 0xab3   : > { %v2825_v59 = vpop.eup %2824 }
 0xb7a   : > { %v1493_v47 = vpop.f32.mrb[32].mxu1 }
 0xb7b   : > { %v4005_v48 = vadd.f32 %v1493_v47, %v3954_v40  ;;  %v2575_v49 = vpop.f32.mrb[33].mxu1  ;;  %v1614_v40 = vsel %vm685_vm3, %v2825_v59, 0.0 }
 0xb7c   : > { %v1496_v50 = vpop.f32.mrb[34].mxu1 }
 0xb7d   : > { %v4008_v51 = vadd.f32 %v1496_v50, %v3956_v43  ;;  %v2576_v52 = vpop.f32.mrb[35].mxu1 }
 0xb82   : > { %v1596_v53 = vpop.f32.mrb[36].mxu1 }
 0xb83   : > { %v1597_v54 = vadd.f32 %v1596_v53, %v3857_v26  ;;  %v2587_v55 = vpop.f32.mrb[37].mxu1 }
 0xb84   : > { %v1599_v56 = vpop.f32.mrb[38].mxu1 }
 0xb85   : > { %v2588_v57 = vpop.f32.mrb[39].mxu1  ;;  %v1605_v58 = vsel %vm685_vm3, %v1597_v54, -inf }
 0xb86   : > { %1606 = vmax.xlane.f32.xlu0 %v1605_v58 }
 0xb8a   : > { %1615 = vadd.xlane.f32.xlu0 %v1614_v40 }
 0xba0   : > { %1628 = vrot.lane.b32.xlu0 %v3837_v17, %s3252_s12 }
 0xc13   : > { %v1607_v60 = vpop.xlane.xlu0 %1606 }
 0xc14   : > { %v1609_v43 = vsub.f32 %v1597_v54, %v1607_v60 }
 0xc16   : > { %v1612_v61 = vmul.f32 1.442695, %v1609_v43 }
 0xc17   : > { %v1616_v62 = vpop.xlane.xlu0 %1615 }
 0xc18   : > { %2826 = vpow2.f32 %v1612_v61 }
 0xc19   : > { %2828 = vrcp.f32 %v1616_v62 }
 0xc1b   : > { %v1629_v26 = vpop.permute.xlu0 %1628 }
 0xc1c   : > { %v1634_v63 = vsel %vm817_vm4, %v1629_v26, 0 }
 0xc1d   : > { %2590 = vmatpush3.bf16.msra.mxu0 %v1634_v63 }
 0xc1e   : > { %2601 = vmatprep.subr.bf16.mxu0 %v3239_v3 }
 0xc22   : > { %v2827_v0 = vpop.eup %2826 }
 0xc23   : > { %v2829_v1 = vpop.eup %2828  ;;  %v1617_v2 = vsel %vm685_vm3, %v2827_v0, 0.0 }
 0xc24   : > { %v1622_v4 = vmul.f32 %v2829_v1, %v2825_v59  ;;  %1618 = vadd.xlane.f32.xlu1 %v1617_v2  ;;  %v1823_v1 = vsub.s32 3, %v3828_v9 }
 0xc26   : > { %v1624_v17 = vmul.f32 %v1622_v4, %v3868_v46 }
 0xc28   : > { %v1626_v7 = vpack.c.bf16 %v1624_v17, %v1624_v17  ;;  %v1982_v17 = vsub.s32 6, %v3828_v9 }
 0xc2a   : > { %2592 = vmatmul.mubr.msk.bf16.vlgmr.msra.gmra.mrb[32].mxu0 %vm685_vm3, %v1626_v7 }
 0xc2b   : > { %2603 = vmatprep.mubr.msk.bf16.mxu0 %vm3240_vm1, %v3239_v3  ;;  %2602 = vmatpush3.bf16.msra.mxu0 %v1730_v12 }
 0xc2c   : > { %2615 = vmatprep.subr.bf16.mxu0 %v3239_v3 }
 0xc35   : > { %1676 = vrot.lane.b32.xlu1 %v3840_v20, %s3252_s12 }
 0xcb1   : > { %v1619_v14 = vpop.xlane.xlu1 %1618 }
 0xcb2   : > { %2830 = vrcp.f32 %v1619_v14  ;;  %v1824_v14 = vrot.slane %v3832_v11, %v1823_v1 }
 0xcb5   : > { %v1677_v13 = vpop.permute.xlu1 %1676 }
 0xcb6   : > { %v1682_v15 = vsel %vm817_vm4, %v1677_v13, 0 }
 0xcb7   : > { %2596 = vmatpush3.bf16.msra.mxu1 %v1682_v15 }
 0xcb8   : > { %2607 = vmatprep.subr.bf16.mxu1 %v3239_v3 }
 0xcbc   : > { %v2831_v16 = vpop.eup %2830 }
 0xcbd   : > { %v1623_v18 = vmul.f32 %v2831_v16, %v2827_v0  ;;  %v1817_v0 = vsub.s32 2, %v3828_v9  ;;  %v1983_v16 = vrot.slane %v3832_v11, %v1982_v17 }
 0xcbf   : > { %v1625_v19 = vmul.f32 %v1623_v18, %v3868_v46  ;;  %v1777_v46 = vsub.s32 1, %v3828_v9  ;;  %v1818_v4 = vrot.slane %v3832_v11, %v1817_v0 }
 0xcc1   : > { %v1627_v21 = vpack.c.bf16 %v1625_v19, %v1625_v19  ;;  %v1778_v31 = vrot.slane %v3832_v11, %v1777_v46 }
 0xcc3   : > { %2598 = vmatmul.mubr.msk.bf16.vlgmr.msra.gmra.mrb[40].mxu1 %vm685_vm3, %v1627_v21 }
 0xcc4   : > { %2611 = vmatprep.mubr.msk.bf16.mxu1 %vm3240_vm1, %v3239_v3 }
 0xcfd   : > { %v1670_v20 = vpop.f32.mrb[32].mxu0 }
 0xcfe   : > { %v2593_v22 = vpop.f32.mrb[33].mxu0 }
 0xcff   : > { %v1673_v23 = vpop.f32.mrb[34].mxu0 }
 0xd00   : > { %v2594_v24 = vpop.f32.mrb[35].mxu0 }
 0xd96   : > { %v1718_v25 = vpop.f32.mrb[40].mxu1 }
 0xd97   : > { %v1724_v27 = vpack.c.bf16 %v1718_v25, %v1670_v20  ;;  %v2599_v28 = vpop.f32.mrb[41].mxu1 }
 0xd98   : > { %v1721_v29 = vpop.f32.mrb[42].mxu1  ;;  %v2796_v28 = vld [vmem:[%s3797_s29] sm:$0xff]  }
 0xd99   : > { %v2600_v30 = vpop.f32.mrb[43].mxu1  ;;  %2604 = vmatmul.mubr.msk.bf16.vlgmr.msra.gmra.mrb[36].mxu0 %vm685_vm3, %v1724_v27  ;;  %v2797_v29 = vld [vmem:[%s3797_s29 + $0x8] sm:$0xff]  }
 0xd9a   : > { %2623 = vmatprep.mubr.msk.bf16.mxu0 %vm3240_vm1, %v3239_v3  ;;  %2616 = vmatpush3.bf16.msra.mxu0 %v2796_v28  ;;  %v2798_v30 = vld [vmem:[%s3797_s29 + $0x10] sm:$0xff]  }
 0xd9b   : > { %2617 = vmatprep.subr.bf16.mxu0 %v3239_v3 }
 0xd9e   : > { %2618 = vmatpush3.bf16.msra.mxu0 %v2797_v29 }
 0xd9f   : > { %2619 = vmatprep.subr.bf16.mxu0 %v3239_v3 }
 0xda2   : > { %2620 = vmatpush3.bf16.msra.mxu0 %v2798_v30 }
 0xda3   : > { %2621 = vmatprep.subr.bf16.mxu0 %v3239_v3 }
 0xe6c   : > { %v1766_v32 = vpop.f32.mrb[36].mxu0 }
 0xe6d   : > { %v1773_v33 = vadd.f32 %v1766_v32, %v4005_v48  ;;  %v2605_v34 = vpop.f32.mrb[37].mxu0  ;;  %v1994_v32 = vsub.s32 7, %v3828_v9 }
 0xe6e   : > { %v1769_v35 = vpop.f32.mrb[38].mxu0 }
 0xe6f   : > { %v1779_v36 = vadd.f32 %v1778_v31, %v1773_v33  ;;  %v1774_v37 = vadd.f32 %v1769_v35, %v4008_v51  ;;  %v2606_v38 = vpop.f32.mrb[39].mxu0  ;;  %v2794_v51 = vld [vmem:[%s517_s27] sm:$0xff]   ;;  %v1995_v33 = vrot.slane %v3832_v11, %v1994_v32 }
 0xe70   : > { %2608 = vmatpush3.bf16.msra.mxu1 %v2794_v51 }
 0xe71   : > { %v1781_v39 = vadd.f32 %v1779_v36, %v3815_v5  ;;  %v1780_v41 = vadd.f32 %v1778_v31, %v1774_v37  ;;  %v2795_v5 = vld [vmem:[%s517_s27 + $0x8] sm:$0xff]   ;;  %2609 = vmatprep.subr.bf16.mxu1 %v3239_v3  ;;  %v1834_v3 = vsub.s32 4, %v3828_v9 }
 0xe72   : > { %v2799_v31 = vld [vmem:[%s3797_s29 + $0x18] sm:$0xff]   ;;  %s4115_s29 = scalar_lea.hbm %s4300_s16, %s2425_s20 }
 0xe73   : > { %v1782_v42 = vadd.f32 %v1780_v41, %v3817_v6  ;;  %v1783_v44 = vsel %vm633_vm2, %v1781_v39, 0.0  ;;  %v1789_v48 = vmul.f32 %v1781_v39, %v1781_v39  ;;  %2622 = vmatpush3.bf16.msra.mxu0 %v2799_v31 }
 0xe74   : > { %1784 = vadd.xlane.f32.xlu1 %v1783_v44  ;;  %2610 = vmatpush3.bf16.msra.mxu1 %v2795_v5  ;;  %v1835_v44 = vrot.slane %v3832_v11, %v1834_v3 }
 0xe75   : > { %v1786_v45 = vsel %vm633_vm2, %v1782_v42, 0.0  ;;  %v1790_v47 = vmul.f32 %v1782_v42, %v1782_v42  ;;  %v1791_v50 = vsel %vm633_vm2, %v1789_v48, 0.0 }
 0xe76   : > { %1787 = vadd.xlane.f32.xlu0 %v1786_v45 }
 0xe77   : > { %v1794_v49 = vsel %vm633_vm2, %v1790_v47, 0.0 }
 0xe78   : > { %1795 = vadd.xlane.f32.xlu1 %v1794_v49 }
 0xe7a   : > { %1792 = vadd.xlane.f32.xlu0 %v1791_v50 }
 0xf01   : > { %v1785_v6 = vpop.xlane.xlu1 %1784 }
 0xf02   : > { %v1797_v53 = vmul.f32 0.03125, %v1785_v6 }
 0xf03   : > { %v1788_v52 = vpop.xlane.xlu0 %1787 }
 0xf04   : > { %v1798_v54 = vmul.f32 0.03125, %v1788_v52  ;;  %v1801_v59 = vmul.f32 %v1797_v53, %v1797_v53  ;;  %v1811_v8 = vsub.f32 %v1781_v39, %v1797_v53 }
 0xf05   : > { %v1796_v55 = vpop.xlane.xlu1 %1795 }
 0xf06   : > { %v1802_v56 = vmul.f32 %v1798_v54, %v1798_v54  ;;  %v1800_v57 = vmul.f32 0.03125, %v1796_v55  ;;  %v1812_v2 = vsub.f32 %v1782_v42, %v1798_v54  ;;  %v4084_v55 = vld [vmem:[%s3801_s11 + $0x8] sm:$0xf] }
 0xf07   : > { %v1793_v58 = vpop.xlane.xlu0 %1792  ;;  %v2017_v11 = vrot.slane %v4084_v55, %v619_v10 }
 0xf08   : > { %v1804_v40 = vsub.f32 %v1800_v57, %v1802_v56  ;;  %v1799_v60 = vmul.f32 0.03125, %v1793_v58 }
 0xf0a   : > { %v1806_v43 = vmax.f32 %v1804_v40, 0.0  ;;  %v1803_v61 = vsub.f32 %v1799_v60, %v1801_v59  ;;  %v2023_v59 = vrot.slane %v4084_v55, %v1777_v46 }
 0xf0c   : > { %v1808_v62 = vadd.f32 1e-05, %v1806_v43  ;;  %v1805_v26 = vmax.f32 %v1803_v61, 0.0 }
 0xf0e   : > { %2832 = vrsqrt.f32 %v1808_v62  ;;  %v1807_v63 = vadd.f32 1e-05, %v1805_v26 }
 0xf10   : > { %2834 = vrsqrt.f32 %v1807_v63 }
 0xf18   : > { %v2833_v7 = vpop.eup %2832 }
 0xf19   : > { %v1814_v12 = vmul.f32 %v2833_v7, %v1812_v2  ;;  %v1909_v7 = vsub.s32 5, %v3828_v9 }
 0xf1a   : > { %v2835_v13 = vpop.eup %2834 }
 0xf1b   : > { %v1820_v15 = vmul.f32 %v1818_v4, %v1814_v12  ;;  %v1813_v18 = vmul.f32 %v2835_v13, %v1811_v8  ;;  %v2848_v8 = vld [vmem:[%s3801_s11] sm:$0xff]  ;;  %s3087_s11 = scalar_lea.vmem %s4117_s19, 256 }
 0xf1c   : > { %v1910_v46 = vrot.slane %v2848_v8, %v1909_v7  ;;  %p3088_p11 = scmp.ne.s32.totalorder %s4117_s19, %s3087_s11  ;;  %p3095_p12 = scmp.lt.s32.totalorder %s3093_s14, %s3087_s11 }
 0xf1d   : > { %v4061_v19 = vadd.f32 %v1824_v14, %v1820_v15  ;;  %v1819_v21 = vmul.f32 %v1818_v4, %v1813_v18 }
 0xf1e   : > { %p3089_p8 = pnand %p3088_p11, %p4301_p7  ;;  %p3096_p2 = por %p3095_p12, %p3094_p0 }
 0xf1f   : > { %v1985_v20 = vmul.f32 %v1983_v16, %v4061_v19  ;;  %v4064_v22 = vadd.f32 %v1824_v14, %v1819_v21 }
 0xf20   : > { %p3090_p9 = pneg %p3089_p8 }
 0xf21   : > { %v1989_v23 = vsel %vm633_vm2, %v1985_v20, 0.0  ;;  %v1827_v24 = vpack.c.bf16 %v4061_v19, %v4064_v22  ;;  %v1984_v25 = vmul.f32 %v1983_v16, %v4064_v22 }
 0xf22   : > { %1990 = vadd.xlane.f32.xlu1 %v1989_v23  ;;  %p3097_p4 = pnand %p3096_p2, %p3090_p9 }
 0xf23   : > { %2612 = vmatmul.mubr.msk.bf16.vlgmr.msra.gmra.mrb[44].mxu1 %vm633_vm2, %v1827_v24  ;;  %v1986_v27 = vsel %vm633_vm2, %v1984_v25, 0.0 }
 0xf24   : > { %1987 = vadd.xlane.f32.xlu0 %v1986_v27 }
 0xfaf   : > { %v1991_v34 = vpop.xlane.xlu1 %1990 }
 0xfb0   : > { %v1997_v35 = vadd.f32 %v1995_v33, %v1991_v34 }
 0xfb1   : > { %v1988_v36 = vpop.xlane.xlu0 %1987 }
 0xfb2   : > { %v2001_v37 = vmul.f32 0.01, %v1997_v35  ;;  %v1996_v38 = vadd.f32 %v1995_v33, %v1988_v36  ;;  %vm1999_vm5 = vcmp.ge.f32.partialorder %v1997_v35, 0.0 }
 0xfb4   : > { %v2000_v39 = vmul.f32 0.01, %v1996_v38  ;;  %v2003_v41 = vsel %vm1999_vm5, %v1997_v35, %v2001_v37  ;;  %vm1998_vm6 = vcmp.ge.f32.partialorder %v1996_v38, 0.0 }
 0xfb5   : > { %2011 = vperm.xlu1 %2790, %v2003_v41  }
 0xfb6   : > { %v2002_v42 = vsel %vm1998_vm6, %v1996_v38, %v2000_v39 }
 0xfb7   : > { %2006 = vperm.xlu0 %2791, %v2002_v42  }
 0xff6   : > { %v1885_v45 = vpop.f32.mrb[44].mxu1 }
 0xff7   : > { %v1886_v47 = vadd.f32 %v1885_v45, %v1835_v44  ;;  %v2613_v48 = vpop.f32.mrb[45].mxu1 }
 0xff8   : > { %v1888_v49 = vpop.f32.mrb[46].mxu1 }
 0xff9   : > { %v1894_v50 = vmul.f32 0.01, %v1886_v47  ;;  %v1889_v51 = vadd.f32 %v1888_v49, %v1835_v44  ;;  %v2614_v5 = vpop.f32.mrb[47].mxu1  ;;  %vm1892_vm7 = vcmp.ge.f32.partialorder %v1886_v47, 0.0 }
 0xffb   : > { %vm1893_vm8 = vcmp.ge.f32.partialorder %v1889_v51, 0.0  ;;  %v1895_v6 = vmul.f32 0.01, %v1889_v51  ;;  %v1896_v52 = vsel %vm1892_vm7, %v1886_v47, %v1894_v50 }
 0xffd   : > { %v1897_v53 = vsel %vm1893_vm8, %v1889_v51, %v1895_v6 }
 0xffe   : > { %v1898_v54 = vpack.c.bf16 %v1897_v53, %v1896_v52  ;;  %v2079_v52 = vrot.slane %v4084_v55, %v1817_v0 }
0x1000   : > { %2624 = vmatmul.mubr.msk.bf16.vlgmr.msra.gmra.mrb[40].mxu0 %vm1935_vm9, %v1898_v54 }
0x1034   : > { %v2012_v57 = vpop.permute.xlu1 %2011 }
0x1035   : > { %v2019_v40 = vmul.f32 %v2017_v11, %v2012_v57 }
0x1036   : > { %v2007_v56 = vpop.permute.xlu0 %2006 }
0x1037   : > { %v2018_v58 = vmul.f32 %v2017_v11, %v2007_v56  ;;  %v2025_v43 = vadd.f32 %v2023_v59, %v2019_v40  ;;  %v2085_v56 = vrot.slane %v4084_v55, %v1823_v1 }
0x1039   : > { %v2024_v60 = vadd.f32 %v2023_v59, %v2018_v58  ;;  %v2027_v62 = vsub.f32 0.0, %v2025_v43 }
0x103b   : > { %v2026_v61 = vsub.f32 0.0, %v2024_v60  ;;  %v2030_v63 = vmul.f32 1.442695, %v2027_v62 }
0x103d   : > { %v2028_v26 = vmul.f32 1.442695, %v2026_v61 }
0x103f   : > { %2836 = vpow2.f32 %v2028_v26 }
0x1040   : > { %2838 = vpow2.f32 %v2030_v63 }
0x1049   : > { %v2837_v2 = vpop.eup %2836 }
0x104a   : > { %v2839_v4 = vpop.eup %2838  ;;  %v2032_v17 = vadd.f32 1.0, %v2837_v2 }
0x104b   : > { %v2033_v10 = vadd.f32 1.0, %v2839_v4 }
0x104c   : > { %2840 = vrcp.f32 %v2032_v17 }
0x104d   : > { %2842 = vrcp.f32 %v2033_v10 }
0x1056   : > { %v2841_v12 = vpop.eup %2840 }
0x1057   : > { %v2843_v14 = vpop.eup %2842  ;;  %v2038_v16 = vsub.f32 1.0, %v2841_v12  ;;  %v2036_v20 = vmul.f32 %v2841_v12, %v4064_v22 }
0x1058   : > { %v2039_v25 = vsub.f32 1.0, %v2843_v14  ;;  %v2037_v29 = vmul.f32 %v2843_v14, %v4061_v19 }
0x10d3   : > { %v1973_v13 = vpop.f32.mrb[40].mxu0 }
0x10d4   : > { %v1974_v15 = vadd.f32 %v1973_v13, %v1910_v46  ;;  %v2625_v18 = vpop.f32.mrb[41].mxu0 }
0x10d5   : > { %v1976_v21 = vpop.f32.mrb[42].mxu0 }
0x10d6   : > { %v2040_v23 = vmul.f32 %v2038_v16, %v1974_v15  ;;  %v1977_v24 = vadd.f32 %v1976_v21, %v1910_v46  ;;  %v2626_v27 = vpop.f32.mrb[43].mxu0 }
0x10d8   : > { %v2042_v28 = vadd.f32 %v2040_v23, %v2036_v20  ;;  %v2041_v30 = vmul.f32 %v2039_v25, %v1977_v24 }
0x10da   : > { %v2043_v31 = vadd.f32 %v2041_v30, %v2037_v29  ;;  %v2044_v32 = vsel %vm633_vm2, %v2042_v28, 0.0  ;;  %v2050_v33 = vmul.f32 %v2042_v28, %v2042_v28 }
0x10db   : > { %2045 = vadd.xlane.f32.xlu1 %v2044_v32 }
0x10dc   : > { %v2047_v34 = vsel %vm633_vm2, %v2043_v31, 0.0  ;;  %v2052_v35 = vsel %vm633_vm2, %v2050_v33, 0.0  ;;  %v2051_v36 = vmul.f32 %v2043_v31, %v2043_v31 }
0x10dd   : > { %2048 = vadd.xlane.f32.xlu0 %v2047_v34 }
0x10de   : > { %v2055_v22 = vsel %vm633_vm2, %v2051_v36, 0.0 }
0x10df   : > { %2053 = vadd.xlane.f32.xlu1 %v2052_v35 }
0x10e3   : > { %2056 = vadd.xlane.f32.xlu1 %v2055_v22 }
0x1168   : > { %v2046_v37 = vpop.xlane.xlu1 %2045 }
0x1169   : > { %v2058_v38 = vmul.f32 0.03125, %v2046_v37 }
0x116a   : > { %v2049_v39 = vpop.xlane.xlu0 %2048 }
0x116b   : > { %v2062_v41 = vmul.f32 %v2058_v38, %v2058_v38  ;;  %v2059_v42 = vmul.f32 0.03125, %v2049_v39  ;;  %v2072_v53 = vsub.f32 %v2042_v28, %v2058_v38 }
0x116c   : > { %v2054_v19 = vpop.xlane.xlu1 %2053 }
0x116d   : > { %v2060_v3 = vmul.f32 0.03125, %v2054_v19  ;;  %v2063_v47 = vmul.f32 %v2059_v42, %v2059_v42  ;;  %v2073_v57 = vsub.f32 %v2043_v31, %v2059_v42 }
0x116f   : > { %v2064_v44 = vsub.f32 %v2060_v3, %v2062_v41 }
0x1170   : > { %v2057_v45 = vpop.xlane.xlu1 %2056 }
0x1171   : > { %v2066_v48 = vmax.f32 %v2064_v44, 0.0  ;;  %v2061_v49 = vmul.f32 0.03125, %v2057_v45 }
0x1173   : > { %v2068_v50 = vadd.f32 1e-05, %v2066_v48  ;;  %v2065_v51 = vsub.f32 %v2061_v49, %v2063_v47 }
0x1175   : > { %2844 = vrsqrt.f32 %v2068_v50  ;;  %v2067_v5 = vmax.f32 %v2065_v51, 0.0 }
0x1177   : > { %v2069_v6 = vadd.f32 1e-05, %v2067_v5 }
0x1179   : > { %2846 = vrsqrt.f32 %v2069_v6 }
0x117f   : > { %v2845_v54 = vpop.eup %2844 }
0x1180   : > { %v2074_v11 = vmul.f32 %v2845_v54, %v2072_v53 }
0x1182   : > { %v2080_v58 = vmul.f32 %v2079_v52, %v2074_v11 }
0x1183   : > { %v2847_v59 = vpop.eup %2846 }
0x1184   : > { %v2075_v40 = vmul.f32 %v2847_v59, %v2073_v57  ;;  %v2086_v60 = vadd.f32 %v2085_v56, %v2080_v58 }
0x1186   : > { %v2081_v0 = vmul.f32 %v2079_v52, %v2075_v40  ;;  %2088 = vst.msk [vmem:[#allocation2] sm:$0xff] %vm633_vm2, %v2086_v60  ;;  %2090 = vst.msk [vmem:[%s3808_s1] sm:$0xff] %vm633_vm2, %v2086_v60 }
0x1188   : > { %v2087_v9 = vadd.f32 %v2085_v56, %v2081_v0 }
0x118a   : > { %2089 = vst.msk [vmem:[#allocation2 + $0x8] sm:$0xff] %vm633_vm2, %v2087_v9  ;;  %2091 = vst.msk [vmem:[%s3808_s1 + $0x8] sm:$0xff] %vm633_vm2, %v2087_v9 }
0x118b   : > { %3100 = shalt.err (!%p3097_p4)
}
0x118c   : > { %s3101_s1 = scalar_lea.hbm %s4115_s29, 256  ;;  %s3105_s4 = scalar_lea.hbm %s4300_s16, 1024 }
0x118d   : > { %p3102_p5 = scmp.ne.s32.totalorder %s4115_s29, %s3101_s1  ;;  %p3106_p3 = scmp.lt.u32.totalorder %s4115_s29, %s4300_s16 }
0x118e   : > { %p3107_p6 = scmp.lt.u32.totalorder %s3105_s4, %s3101_s1  ;;  %p3109_p11 = scmp.lt.u32.totalorder %s3101_s1, %s4115_s29 }
0x118f   : > { %p3103_p13 = pnand %p3102_p5, %p4301_p7 }
0x1190   : > { %p3108_p10 = por %p3107_p6, %p3106_p3 }
0x1191   : > { %p3104_p1 = pneg %p3103_p13 }
0x1192   : > { %p3110_p8 = por %p3109_p11, %p3108_p10 }
0x1194   : > { %p3111_p9 = pnand %p3110_p8, %p3104_p1 }
0x1196   : > { %3114 = shalt.err (!%p3111_p9)
}
0x1197   : > { %s3254_s25 = smov 128   ;;  %s3255_s7 = smov 8  }
0x1198   : > { %2645 = dma.vmem_to_hbm [thread:$0]  (%p4301_p7), %s4117_s19, 256, %s4115_s29, %s2093_s2, %s3254_s25, %s3254_s25, %s3255_s7  }
0x1199 PF: > { %s4302_s21 = sld [smem:[#allocation31_spill]]  ;;  %s4303_s12 = sld [smem:[#allocation24_spill]] }
0x119a   : > { %s4304_s8 = sld [smem:[#allocation36_spill]] }
0x119f   : > { %p2680_p0 = scmp.ge.s32.totalorder %s4302_s21, 2  ;;  %s2123_s23 = sand.u32 1, %s4303_s12  }
0x11a0   : > { %p4305_p12 = scmp.ne.s32.totalorder %s4304_s8, 0  ;;  %s2124_s30 = scalar_lea.sflag [#allocation5], %s2123_s23 }
0x11a2   : > { %p2674_p2 = pnand %p2680_p0, %p4305_p12 }
0x11a4   : > { %3180 = dma.done.wait (!%p2674_p2), %s2124_s30, 256  }
0x11a5   : > { %3182 = vsyncadd (!%p2674_p2), %s2124_s30, 4294967040  ;;  %s34_s15 = sadd.s32 1, %s4302_s21   ;;  %s4306_s13 = sld [smem:[#allocation25_spill]] }
0x11a6   : > { %p31_p4 = scmp.ge.s32.totalorder %s34_s15, 6   ;;  %s4307_s29 = sld [smem:[#allocation35_spill]] }
0x11a7   : > { %s4308_s24 = sld [smem:[#allocation26_spill]]  ;;  %s4309_s10 = sld [smem:[#allocation34_spill]] }
0x11a8   : > { %s4310_s11 = sld [smem:[#allocation29_spill]]  ;;  %s4311_s12 = sld [smem:[#allocation30_spill]] }
0x11a9   : > { %s4312_s22 = sld [smem:[#allocation32_spill]]  ;;  %s4313_s14 = sld [smem:[#allocation33_spill]] }
0x11aa   : > { %s4314_s27 = smov %s3189_s28  ;;  %s4316_s30 = smov %s3201_s9 }
0x11ab   : > { %s4315_s28 = smov %s4306_s13  ;;  %33 = sbr.rel (!%p31_p4) target bundleno = 26 (0x1a), region = 178 }
0x11ad   : > { %s4317_s9 = smov %s4308_s24 }
0x11af   : > { %s4318_s13 = smov %s4312_s22 }
0x11b2   :  { %2129 = vsyncpa [#allocation4], 1 }
0x11b3   :  { %2131 = vsyncpa [#allocation4 + $0x1], 1 }
0x11b4   :  { %2132 = vsyncpa [#allocation7], 1 }
0x11b5   :  { %2134 = vsyncpa [#allocation7 + $0x1], 1 }
0x11b6   :  { %2135 = vsyncpa [#allocation10], 1 }
0x11b7   :  { %2137 = vsyncpa [#allocation10 + $0x1], 1 }
0x11b8   :  { %2138 = vsyncpa [#allocation13], 1 }
0x11b9   :  { %2140 = vsyncpa [#allocation13 + $0x1], 1 }
0x11ba   :  { %2141 = vsyncpa [#allocation16], 1 }
0x11bb   :  { %2143 = vsyncpa [#allocation16 + $0x1], 1 }
0x11bc   :  { %2144 = vsyncpa [#allocation5], 1 }
0x11bd   :  { %2146 = vsyncpa [#allocation5 + $0x1], 1 }

</bundles_post_ra>
